<compile_context>
chip_gen: v7x
topology: tpu7x:2x2x1
jax: 0.10.0
libtpu: 0.0.40
codegen_flags: <defaults>
</compile_context>

<pallas_src>
import functools

import jax
import jax.numpy as jnp
from jax.experimental import pallas as pl
from jax.experimental.pallas import tpu as pltpu

KERNEL_SIZE = 7
PADDING = 3


def _spatial_attention_kernel(x_ref, w_ref, o_ref, avg_pad, max_pad,
                              *, H, W, K, P, chunk):
    # x_ref:   (BB, C, H*W) lane-dense input block (VMEM)
    # w_ref:   (2*K*K,) f32 conv weights in SMEM, layout (in_ch, ky, kx)
    # o_ref:   (1, BB, H*Ws) strided-layout output block
    # avg_pad / max_pad: (BB, (H+2P)*Ws + 2P) f32 VMEM scratch holding the
    #                    row-strided, zero-padded avg / max maps.
    BB, C, HW = x_ref.shape
    Ws = W + 2 * P
    HWs = H * Ws

    # ---- channel mean / max: full-vreg chunked reduction -------------------
    if C <= chunk:
        xb = x_ref[...].astype(jnp.float32)                 # (BB, C, HW)
        csum = jnp.sum(xb, axis=1)                           # (BB, HW)
        cmax = jnp.max(xb, axis=1)
    else:
        n_chunks = C // chunk
        rem = C - n_chunks * chunk

        def body(i, carry):
            s, m = carry
            c0 = pl.multiple_of(i * chunk, chunk)
            xc = x_ref[:, pl.ds(c0, chunk), :].astype(jnp.float32)
            return s + xc, jnp.maximum(m, xc)

        x0 = x_ref[:, 0:chunk, :].astype(jnp.float32)        # (BB, chunk, HW)
        s, m = jax.lax.fori_loop(1, n_chunks, body, (x0, x0), unroll=2)
        csum = jnp.sum(s, axis=1)
        cmax = jnp.max(m, axis=1)
        if rem:
            xr = x_ref[:, C - rem:C, :].astype(jnp.float32)
            csum = csum + jnp.sum(xr, axis=1)
            cmax = jnp.maximum(cmax, jnp.max(xr, axis=1))
    avg = csum * (1.0 / C)                                    # (BB, HW)

    # ---- build row-strided zero-padded maps in VMEM scratch -----------------
    # Data row r lives at lanes [(P+r)*Ws + P, (P+r)*Ws + P + W); everything
    # else stays zero, so vertical AND horizontal conv zero-padding come for
    # free and no tap can wrap across rows (no column masks needed).
    avg_pad[...] = jnp.zeros_like(avg_pad)
    max_pad[...] = jnp.zeros_like(max_pad)
    for r in range(H):
        base = (P + r) * Ws + P
        avg_pad[:, base:base + W] = avg[:, r * W:(r + 1) * W]
        max_pad[:, base:base + W] = cmax[:, r * W:(r + 1) * W]

    # ---- KxK conv: each tap is a static VMEM slice at offset ky*Ws + kx -----
    acc = jnp.zeros((BB, HWs), jnp.float32)
    for ky in range(K):
        for kx in range(K):
            w_a = w_ref[ky * K + kx]              # avg-channel weight
            w_m = w_ref[K * K + ky * K + kx]      # max-channel weight
            off = ky * Ws + kx
            acc = acc + (w_a * avg_pad[:, off:off + HWs] +
                         w_m * max_pad[:, off:off + HWs])

    o_ref[...] = jax.nn.sigmoid(acc)[None].astype(o_ref.dtype)


def _vmem_capacity_bytes():
    try:
        cap = getattr(pltpu.get_tpu_info(), "vmem_capacity_bytes", None)
        if cap:
            return int(cap)
    except Exception:
        pass
    return 64 * 1024 * 1024      # conservative default (v7x per-TensorCore VMEM)


def _pick_batch_block(N, per_batch_bytes, vmem_cap, min_grid_steps=4):
    """Largest divisor of N such that the x block stays around VMEM/16 and
    there are >= min_grid_steps grid steps when N allows (>= 2 per TensorCore
    on v7x so the input DMA overlaps compute)."""
    budget = max(1 << 20, vmem_cap // 16)
    cap = max(1, min(N, budget // max(per_batch_bytes, 1)))
    steps = min(N, min_grid_steps)
    cap = min(cap, max(1, N // steps))
    for bb in range(cap, 0, -1):
        if N % bb == 0:
            return bb
    return 1


def spatial_attention(x, conv_weight, padding=PADDING):
    """x: (N, C, H, W); conv_weight: (1, 2, K, K) (PyTorch OIHW, no bias)."""
    N, C, H, W = x.shape
    K = conv_weight.shape[-1]
    P = padding
    assert conv_weight.shape == (1, 2, K, K)
    assert K == 2 * P + 1, "same-size conv assumed (kernel_size == 2*padding+1)"

    HW = H * W
    Ws = W + 2 * P
    HWs = H * Ws
    pad_len = (H + 2 * P) * Ws + 2 * P      # covers the deepest tap slice exactly

    x_flat = x.reshape(N, C, HW)                          # free contiguous view
    w_flat = conv_weight.reshape(-1).astype(jnp.float32)  # (2*K*K,)

    vmem_cap = _vmem_capacity_bytes()
    itemsize = x.dtype.itemsize
    BB = _pick_batch_block(N, C * HW * itemsize, vmem_cap)
    grid = (N // BB,)

    chunk = 16 if itemsize == 2 else 8        # full-sublane channel chunk

    # Raise the scoped VMEM limit to cover double-buffered blocks + scratch.
    block_in = BB * C * HW * itemsize
    block_out = BB * HWs * itemsize
    scratch_bytes = 2 * max(BB, 8) * (-(-pad_len // 128) * 128) * 4
    need = 2 * block_in + 2 * block_out + scratch_bytes + (2 << 20)
    vmem_limit = int(min(max(need, 32 << 20), int(0.9 * vmem_cap)))

    # TODO(synk): for C*H*W per batch element too large for VMEM (e.g. C=2048
    # at 56x56), add a channel-tile grid axis with running sum/max VMEM scratch
    # and a pl.when finalize so the resident block stays bounded.
    kernel = functools.partial(_spatial_attention_kernel,
                               H=H, W=W, K=K, P=P, chunk=chunk)
    out = pl.pallas_call(
        kernel,
        out_shape=jax.ShapeDtypeStruct((N // BB, BB, HWs), x.dtype),
        grid=grid,
        in_specs=[
            pl.BlockSpec((BB, C, HW), lambda n: (n, 0, 0)),
            pl.BlockSpec(memory_space=pltpu.MemorySpace.SMEM),
        ],
        out_specs=pl.BlockSpec((1, BB, HWs), lambda n: (n, 0, 0)),
        scratch_shapes=[
            pltpu.VMEM((BB, pad_len), jnp.float32),
            pltpu.VMEM((BB, pad_len), jnp.float32),
        ],
        compiler_params=pltpu.CompilerParams(
            dimension_semantics=("parallel",),
            vmem_limit_bytes=vmem_limit,
        ),
    )(x_flat, w_flat)

    # Drop the 2P junk columns of each strided row; restore NCHW.
    out = out.reshape(N, H, Ws)[:, :, :W].reshape(N, 1, H, W)
    return out


def spatial_attention_ref(x, conv_weight, padding=PADDING):
    """Pure-JAX reference matching PyTorch semantics."""
    avg = jnp.mean(x, axis=1, keepdims=True)
    mx = jnp.max(x, axis=1, keepdims=True)
    cat = jnp.concatenate([avg, mx], axis=1)              # (N, 2, H, W)
    out = jax.lax.conv_general_dilated(
        cat, conv_weight, window_strides=(1, 1),
        padding=((padding, padding), (padding, padding)),
        dimension_numbers=("NCHW", "OIHW", "NCHW"))
    return jax.nn.sigmoid(out)


if __name__ == "__main__":
    key = jax.random.PRNGKey(0)
    kx_key, kw_key = jax.random.split(key)

    N, C, H, W = 2, 4, 16, 16
    x = jax.random.normal(kx_key, (N, C, H, W), dtype=jnp.float32)
    # Deterministic synthetic conv weight (nn.Conv2d(2, 1, 7, bias=False) shape).
    conv_weight = 0.1 * jax.random.normal(kw_key, (1, 2, 7, 7), dtype=jnp.float32)

    out = jax.block_until_ready(spatial_attention(x, conv_weight))
    ref = spatial_attention_ref(x, conv_weight)

    assert out.shape == (N, 1, H, W)
    err = jnp.max(jnp.abs(out - ref))
    assert jnp.allclose(out, ref, atol=1e-5, rtol=1e-5), f"max abs err {err}"

    print("KERNEL_OK")
</pallas_src>

<mosaic_0001>
module attributes {stable_mosaic.version = 11 : i64} {
  func.func @_spatial_attention_kernel(%arg0: i32, %arg1: memref<1x4x256xf32, #tpu.memory_space<vmem>>, %arg2: memref<98xf32, #tpu.memory_space<smem>>, %arg3: memref<1x1x352xf32, #tpu.memory_space<vmem>>, %arg4: memref<1x490xf32, #tpu.memory_space<vmem>>, %arg5: memref<1x490xf32, #tpu.memory_space<vmem>>) attributes {dimension_semantics = [#tpu.dimension_semantics<parallel>], iteration_bounds = array<i64: 2>, scalar_prefetch = 0 : i64, scratch_operands = 2 : i64, tpu.core_type = #tpu.core_type<tc>, window_params = [{transform_indices = @transform_0, window_bounds = array<i64: 1, 4, 256>}, {transform_indices = @transform_1, window_bounds = array<i64: 98>}, {transform_indices = @transform_2, window_bounds = array<i64: 1, 1, 352>}]} {
    %c0 = arith.constant 0 : index
    %c0_0 = arith.constant 0 : index
    %c0_1 = arith.constant 0 : index
    %0 = vector.load %arg1[%c0, %c0_0, %c0_1] : memref<1x4x256xf32, #tpu.memory_space<vmem>>, vector<1x4x256xf32>
    %cst = arith.constant dense<0.000000e+00> : vector<1x256xf32>
    %1 = vector.multi_reduction <add>, %0, %cst [1] : vector<1x4x256xf32> to vector<1x256xf32>
    %cst_2 = arith.constant dense<0xFF800000> : vector<1x256xf32>
    %2 = vector.multi_reduction <maximumf>, %0, %cst_2 [1] : vector<1x4x256xf32> to vector<1x256xf32>
    %cst_3 = arith.constant 2.500000e-01 : f32
    %3 = vector.broadcast %cst_3 : f32 to vector<1x256xf32>
    %4 = arith.mulf %1, %3 : vector<1x256xf32>
    %cst_4 = arith.constant 0.000000e+00 : f32
    %5 = vector.broadcast %cst_4 : f32 to vector<1x490xf32>
    %c0_5 = arith.constant 0 : index
    %c0_6 = arith.constant 0 : index
    %6 = vector.load %arg4[%c0_5, %c0_6] : memref<1x490xf32, #tpu.memory_space<vmem>>, vector<1x490xf32>
    tpu.vector_store %arg4[%c0_5, %c0_6], %5 {strides = array<i32>} : memref<1x490xf32, #tpu.memory_space<vmem>>, vector<1x490xf32>,
    %cst_7 = arith.constant 0.000000e+00 : f32
    %7 = vector.broadcast %cst_7 : f32 to vector<1x490xf32>
    %c0_8 = arith.constant 0 : index
    %c0_9 = arith.constant 0 : index
    %8 = vector.load %arg5[%c0_8, %c0_9] : memref<1x490xf32, #tpu.memory_space<vmem>>, vector<1x490xf32>
    tpu.vector_store %arg5[%c0_8, %c0_9], %7 {strides = array<i32>} : memref<1x490xf32, #tpu.memory_space<vmem>>, vector<1x490xf32>,
    %9 = vector.extract_strided_slice %4 {offsets = [0, 0], sizes = [1, 16], strides = [1, 1]} : vector<1x256xf32> to vector<1x16xf32>
    %c0_10 = arith.constant 0 : index
    %c69 = arith.constant 69 : index
    %10 = vector.load %arg4[%c0_10, %c69] : memref<1x490xf32, #tpu.memory_space<vmem>>, vector<1x16xf32>
    tpu.vector_store %arg4[%c0_10, %c69], %9 {strides = array<i32>} : memref<1x490xf32, #tpu.memory_space<vmem>>, vector<1x16xf32>,
    %11 = vector.extract_strided_slice %2 {offsets = [0, 0], sizes = [1, 16], strides = [1, 1]} : vector<1x256xf32> to vector<1x16xf32>
    %c0_11 = arith.constant 0 : index
    %c69_12 = arith.constant 69 : index
    %12 = vector.load %arg5[%c0_11, %c69_12] : memref<1x490xf32, #tpu.memory_space<vmem>>, vector<1x16xf32>
    tpu.vector_store %arg5[%c0_11, %c69_12], %11 {strides = array<i32>} : memref<1x490xf32, #tpu.memory_space<vmem>>, vector<1x16xf32>,
    %13 = vector.extract_strided_slice %4 {offsets = [0, 16], sizes = [1, 16], strides = [1, 1]} : vector<1x256xf32> to vector<1x16xf32>
    %c0_13 = arith.constant 0 : index
    %c91 = arith.constant 91 : index
    %14 = vector.load %arg4[%c0_13, %c91] : memref<1x490xf32, #tpu.memory_space<vmem>>, vector<1x16xf32>
    tpu.vector_store %arg4[%c0_13, %c91], %13 {strides = array<i32>} : memref<1x490xf32, #tpu.memory_space<vmem>>, vector<1x16xf32>,
    %15 = vector.extract_strided_slice %2 {offsets = [0, 16], sizes = [1, 16], strides = [1, 1]} : vector<1x256xf32> to vector<1x16xf32>
    %c0_14 = arith.constant 0 : index
    %c91_15 = arith.constant 91 : index
    %16 = vector.load %arg5[%c0_14, %c91_15] : memref<1x490xf32, #tpu.memory_space<vmem>>, vector<1x16xf32>
    tpu.vector_store %arg5[%c0_14, %c91_15], %15 {strides = array<i32>} : memref<1x490xf32, #tpu.memory_space<vmem>>, vector<1x16xf32>,
    %17 = vector.extract_strided_slice %4 {offsets = [0, 32], sizes = [1, 16], strides = [1, 1]} : vector<1x256xf32> to vector<1x16xf32>
    %c0_16 = arith.constant 0 : index
    %c113 = arith.constant 113 : index
    %18 = vector.load %arg4[%c0_16, %c113] : memref<1x490xf32, #tpu.memory_space<vmem>>, vector<1x16xf32>
    tpu.vector_store %arg4[%c0_16, %c113], %17 {strides = array<i32>} : memref<1x490xf32, #tpu.memory_space<vmem>>, vector<1x16xf32>,
    %19 = vector.extract_strided_slice %2 {offsets = [0, 32], sizes = [1, 16], strides = [1, 1]} : vector<1x256xf32> to vector<1x16xf32>
    %c0_17 = arith.constant 0 : index
    %c113_18 = arith.constant 113 : index
    %20 = vector.load %arg5[%c0_17, %c113_18] : memref<1x490xf32, #tpu.memory_space<vmem>>, vector<1x16xf32>
    tpu.vector_store %arg5[%c0_17, %c113_18], %19 {strides = array<i32>} : memref<1x490xf32, #tpu.memory_space<vmem>>, vector<1x16xf32>,
    %21 = vector.extract_strided_slice %4 {offsets = [0, 48], sizes = [1, 16], strides = [1, 1]} : vector<1x256xf32> to vector<1x16xf32>
    %c0_19 = arith.constant 0 : index
    %c135 = arith.constant 135 : index
    %22 = vector.load %arg4[%c0_19, %c135] : memref<1x490xf32, #tpu.memory_space<vmem>>, vector<1x16xf32>
    tpu.vector_store %arg4[%c0_19, %c135], %21 {strides = array<i32>} : memref<1x490xf32, #tpu.memory_space<vmem>>, vector<1x16xf32>,
    %23 = vector.extract_strided_slice %2 {offsets = [0, 48], sizes = [1, 16], strides = [1, 1]} : vector<1x256xf32> to vector<1x16xf32>
    %c0_20 = arith.constant 0 : index
    %c135_21 = arith.constant 135 : index
    %24 = vector.load %arg5[%c0_20, %c135_21] : memref<1x490xf32, #tpu.memory_space<vmem>>, vector<1x16xf32>
    tpu.vector_store %arg5[%c0_20, %c135_21], %23 {strides = array<i32>} : memref<1x490xf32, #tpu.memory_space<vmem>>, vector<1x16xf32>,
    %25 = vector.extract_strided_slice %4 {offsets = [0, 64], sizes = [1, 16], strides = [1, 1]} : vector<1x256xf32> to vector<1x16xf32>
    %c0_22 = arith.constant 0 : index
    %c157 = arith.constant 157 : index
    %26 = vector.load %arg4[%c0_22, %c157] : memref<1x490xf32, #tpu.memory_space<vmem>>, vector<1x16xf32>
    tpu.vector_store %arg4[%c0_22, %c157], %25 {strides = array<i32>} : memref<1x490xf32, #tpu.memory_space<vmem>>, vector<1x16xf32>,
    %27 = vector.extract_strided_slice %2 {offsets = [0, 64], sizes = [1, 16], strides = [1, 1]} : vector<1x256xf32> to vector<1x16xf32>
    %c0_23 = arith.constant 0 : index
    %c157_24 = arith.constant 157 : index
    %28 = vector.load %arg5[%c0_23, %c157_24] : memref<1x490xf32, #tpu.memory_space<vmem>>, vector<1x16xf32>
    tpu.vector_store %arg5[%c0_23, %c157_24], %27 {strides = array<i32>} : memref<1x490xf32, #tpu.memory_space<vmem>>, vector<1x16xf32>,
    %29 = vector.extract_strided_slice %4 {offsets = [0, 80], sizes = [1, 16], strides = [1, 1]} : vector<1x256xf32> to vector<1x16xf32>
    %c0_25 = arith.constant 0 : index
    %c179 = arith.constant 179 : index
    %30 = vector.load %arg4[%c0_25, %c179] : memref<1x490xf32, #tpu.memory_space<vmem>>, vector<1x16xf32>
    tpu.vector_store %arg4[%c0_25, %c179], %29 {strides = array<i32>} : memref<1x490xf32, #tpu.memory_space<vmem>>, vector<1x16xf32>,
    %31 = vector.extract_strided_slice %2 {offsets = [0, 80], sizes = [1, 16], strides = [1, 1]} : vector<1x256xf32> to vector<1x16xf32>
    %c0_26 = arith.constant 0 : index
    %c179_27 = arith.constant 179 : index
    %32 = vector.load %arg5[%c0_26, %c179_27] : memref<1x490xf32, #tpu.memory_space<vmem>>, vector<1x16xf32>
    tpu.vector_store %arg5[%c0_26, %c179_27], %31 {strides = array<i32>} : memref<1x490xf32, #tpu.memory_space<vmem>>, vector<1x16xf32>,
    %33 = vector.extract_strided_slice %4 {offsets = [0, 96], sizes = [1, 16], strides = [1, 1]} : vector<1x256xf32> to vector<1x16xf32>
    %c0_28 = arith.constant 0 : index
    %c201 = arith.constant 201 : index
    %34 = vector.load %arg4[%c0_28, %c201] : memref<1x490xf32, #tpu.memory_space<vmem>>, vector<1x16xf32>
    tpu.vector_store %arg4[%c0_28, %c201], %33 {strides = array<i32>} : memref<1x490xf32, #tpu.memory_space<vmem>>, vector<1x16xf32>,
    %35 = vector.extract_strided_slice %2 {offsets = [0, 96], sizes = [1, 16], strides = [1, 1]} : vector<1x256xf32> to vector<1x16xf32>
    %c0_29 = arith.constant 0 : index
    %c201_30 = arith.constant 201 : index
    %36 = vector.load %arg5[%c0_29, %c201_30] : memref<1x490xf32, #tpu.memory_space<vmem>>, vector<1x16xf32>
    tpu.vector_store %arg5[%c0_29, %c201_30], %35 {strides = array<i32>} : memref<1x490xf32, #tpu.memory_space<vmem>>, vector<1x16xf32>,
    %37 = vector.extract_strided_slice %4 {offsets = [0, 112], sizes = [1, 16], strides = [1, 1]} : vector<1x256xf32> to vector<1x16xf32>
    %c0_31 = arith.constant 0 : index
    %c223 = arith.constant 223 : index
    %38 = vector.load %arg4[%c0_31, %c223] : memref<1x490xf32, #tpu.memory_space<vmem>>, vector<1x16xf32>
    tpu.vector_store %arg4[%c0_31, %c223], %37 {strides = array<i32>} : memref<1x490xf32, #tpu.memory_space<vmem>>, vector<1x16xf32>,
    %39 = vector.extract_strided_slice %2 {offsets = [0, 112], sizes = [1, 16], strides = [1, 1]} : vector<1x256xf32> to vector<1x16xf32>
    %c0_32 = arith.constant 0 : index
    %c223_33 = arith.constant 223 : index
    %40 = vector.load %arg5[%c0_32, %c223_33] : memref<1x490xf32, #tpu.memory_space<vmem>>, vector<1x16xf32>
    tpu.vector_store %arg5[%c0_32, %c223_33], %39 {strides = array<i32>} : memref<1x490xf32, #tpu.memory_space<vmem>>, vector<1x16xf32>,
    %41 = vector.extract_strided_slice %4 {offsets = [0, 128], sizes = [1, 16], strides = [1, 1]} : vector<1x256xf32> to vector<1x16xf32>
    %c0_34 = arith.constant 0 : index
    %c245 = arith.constant 245 : index
    %42 = vector.load %arg4[%c0_34, %c245] : memref<1x490xf32, #tpu.memory_space<vmem>>, vector<1x16xf32>
    tpu.vector_store %arg4[%c0_34, %c245], %41 {strides = array<i32>} : memref<1x490xf32, #tpu.memory_space<vmem>>, vector<1x16xf32>,
    %43 = vector.extract_strided_slice %2 {offsets = [0, 128], sizes = [1, 16], strides = [1, 1]} : vector<1x256xf32> to vector<1x16xf32>
    %c0_35 = arith.constant 0 : index
    %c245_36 = arith.constant 245 : index
    %44 = vector.load %arg5[%c0_35, %c245_36] : memref<1x490xf32, #tpu.memory_space<vmem>>, vector<1x16xf32>
    tpu.vector_store %arg5[%c0_35, %c245_36], %43 {strides = array<i32>} : memref<1x490xf32, #tpu.memory_space<vmem>>, vector<1x16xf32>,
    %45 = vector.extract_strided_slice %4 {offsets = [0, 144], sizes = [1, 16], strides = [1, 1]} : vector<1x256xf32> to vector<1x16xf32>
    %c0_37 = arith.constant 0 : index
    %c267 = arith.constant 267 : index
    %46 = vector.load %arg4[%c0_37, %c267] : memref<1x490xf32, #tpu.memory_space<vmem>>, vector<1x16xf32>
    tpu.vector_store %arg4[%c0_37, %c267], %45 {strides = array<i32>} : memref<1x490xf32, #tpu.memory_space<vmem>>, vector<1x16xf32>,
    %47 = vector.extract_strided_slice %2 {offsets = [0, 144], sizes = [1, 16], strides = [1, 1]} : vector<1x256xf32> to vector<1x16xf32>
    %c0_38 = arith.constant 0 : index
    %c267_39 = arith.constant 267 : index
    %48 = vector.load %arg5[%c0_38, %c267_39] : memref<1x490xf32, #tpu.memory_space<vmem>>, vector<1x16xf32>
    tpu.vector_store %arg5[%c0_38, %c267_39], %47 {strides = array<i32>} : memref<1x490xf32, #tpu.memory_space<vmem>>, vector<1x16xf32>,
    %49 = vector.extract_strided_slice %4 {offsets = [0, 160], sizes = [1, 16], strides = [1, 1]} : vector<1x256xf32> to vector<1x16xf32>
    %c0_40 = arith.constant 0 : index
    %c289 = arith.constant 289 : index
    %50 = vector.load %arg4[%c0_40, %c289] : memref<1x490xf32, #tpu.memory_space<vmem>>, vector<1x16xf32>
    tpu.vector_store %arg4[%c0_40, %c289], %49 {strides = array<i32>} : memref<1x490xf32, #tpu.memory_space<vmem>>, vector<1x16xf32>,
    %51 = vector.extract_strided_slice %2 {offsets = [0, 160], sizes = [1, 16], strides = [1, 1]} : vector<1x256xf32> to vector<1x16xf32>
    %c0_41 = arith.constant 0 : index
    %c289_42 = arith.constant 289 : index
    %52 = vector.load %arg5[%c0_41, %c289_42] : memref<1x490xf32, #tpu.memory_space<vmem>>, vector<1x16xf32>
    tpu.vector_store %arg5[%c0_41, %c289_42], %51 {strides = array<i32>} : memref<1x490xf32, #tpu.memory_space<vmem>>, vector<1x16xf32>,
    %53 = vector.extract_strided_slice %4 {offsets = [0, 176], sizes = [1, 16], strides = [1, 1]} : vector<1x256xf32> to vector<1x16xf32>
    %c0_43 = arith.constant 0 : index
    %c311 = arith.constant 311 : index
    %54 = vector.load %arg4[%c0_43, %c311] : memref<1x490xf32, #tpu.memory_space<vmem>>, vector<1x16xf32>
    tpu.vector_store %arg4[%c0_43, %c311], %53 {strides = array<i32>} : memref<1x490xf32, #tpu.memory_space<vmem>>, vector<1x16xf32>,
    %55 = vector.extract_strided_slice %2 {offsets = [0, 176], sizes = [1, 16], strides = [1, 1]} : vector<1x256xf32> to vector<1x16xf32>
    %c0_44 = arith.constant 0 : index
    %c311_45 = arith.constant 311 : index
    %56 = vector.load %arg5[%c0_44, %c311_45] : memref<1x490xf32, #tpu.memory_space<vmem>>, vector<1x16xf32>
    tpu.vector_store %arg5[%c0_44, %c311_45], %55 {strides = array<i32>} : memref<1x490xf32, #tpu.memory_space<vmem>>, vector<1x16xf32>,
    %57 = vector.extract_strided_slice %4 {offsets = [0, 192], sizes = [1, 16], strides = [1, 1]} : vector<1x256xf32> to vector<1x16xf32>
    %c0_46 = arith.constant 0 : index
    %c333 = arith.constant 333 : index
    %58 = vector.load %arg4[%c0_46, %c333] : memref<1x490xf32, #tpu.memory_space<vmem>>, vector<1x16xf32>
    tpu.vector_store %arg4[%c0_46, %c333], %57 {strides = array<i32>} : memref<1x490xf32, #tpu.memory_space<vmem>>, vector<1x16xf32>,
    %59 = vector.extract_strided_slice %2 {offsets = [0, 192], sizes = [1, 16], strides = [1, 1]} : vector<1x256xf32> to vector<1x16xf32>
    %c0_47 = arith.constant 0 : index
    %c333_48 = arith.constant 333 : index
    %60 = vector.load %arg5[%c0_47, %c333_48] : memref<1x490xf32, #tpu.memory_space<vmem>>, vector<1x16xf32>
    tpu.vector_store %arg5[%c0_47, %c333_48], %59 {strides = array<i32>} : memref<1x490xf32, #tpu.memory_space<vmem>>, vector<1x16xf32>,
    %61 = vector.extract_strided_slice %4 {offsets = [0, 208], sizes = [1, 16], strides = [1, 1]} : vector<1x256xf32> to vector<1x16xf32>
    %c0_49 = arith.constant 0 : index
    %c355 = arith.constant 355 : index
    %62 = vector.load %arg4[%c0_49, %c355] : memref<1x490xf32, #tpu.memory_space<vmem>>, vector<1x16xf32>
    tpu.vector_store %arg4[%c0_49, %c355], %61 {strides = array<i32>} : memref<1x490xf32, #tpu.memory_space<vmem>>, vector<1x16xf32>,
    %63 = vector.extract_strided_slice %2 {offsets = [0, 208], sizes = [1, 16], strides = [1, 1]} : vector<1x256xf32> to vector<1x16xf32>
    %c0_50 = arith.constant 0 : index
    %c355_51 = arith.constant 355 : index
    %64 = vector.load %arg5[%c0_50, %c355_51] : memref<1x490xf32, #tpu.memory_space<vmem>>, vector<1x16xf32>
    tpu.vector_store %arg5[%c0_50, %c355_51], %63 {strides = array<i32>} : memref<1x490xf32, #tpu.memory_space<vmem>>, vector<1x16xf32>,
    %65 = vector.extract_strided_slice %4 {offsets = [0, 224], sizes = [1, 16], strides = [1, 1]} : vector<1x256xf32> to vector<1x16xf32>
    %c0_52 = arith.constant 0 : index
    %c377 = arith.constant 377 : index
    %66 = vector.load %arg4[%c0_52, %c377] : memref<1x490xf32, #tpu.memory_space<vmem>>, vector<1x16xf32>
    tpu.vector_store %arg4[%c0_52, %c377], %65 {strides = array<i32>} : memref<1x490xf32, #tpu.memory_space<vmem>>, vector<1x16xf32>,
    %67 = vector.extract_strided_slice %2 {offsets = [0, 224], sizes = [1, 16], strides = [1, 1]} : vector<1x256xf32> to vector<1x16xf32>
    %c0_53 = arith.constant 0 : index
    %c377_54 = arith.constant 377 : index
    %68 = vector.load %arg5[%c0_53, %c377_54] : memref<1x490xf32, #tpu.memory_space<vmem>>, vector<1x16xf32>
    tpu.vector_store %arg5[%c0_53, %c377_54], %67 {strides = array<i32>} : memref<1x490xf32, #tpu.memory_space<vmem>>, vector<1x16xf32>,
    %69 = vector.extract_strided_slice %4 {offsets = [0, 240], sizes = [1, 16], strides = [1, 1]} : vector<1x256xf32> to vector<1x16xf32>
    %c0_55 = arith.constant 0 : index
    %c399 = arith.constant 399 : index
    %70 = vector.load %arg4[%c0_55, %c399] : memref<1x490xf32, #tpu.memory_space<vmem>>, vector<1x16xf32>
    tpu.vector_store %arg4[%c0_55, %c399], %69 {strides = array<i32>} : memref<1x490xf32, #tpu.memory_space<vmem>>, vector<1x16xf32>,
    %71 = vector.extract_strided_slice %2 {offsets = [0, 240], sizes = [1, 16], strides = [1, 1]} : vector<1x256xf32> to vector<1x16xf32>
    %c0_56 = arith.constant 0 : index
    %c399_57 = arith.constant 399 : index
    %72 = vector.load %arg5[%c0_56, %c399_57] : memref<1x490xf32, #tpu.memory_space<vmem>>, vector<1x16xf32>
    tpu.vector_store %arg5[%c0_56, %c399_57], %71 {strides = array<i32>} : memref<1x490xf32, #tpu.memory_space<vmem>>, vector<1x16xf32>,
    %cst_58 = arith.constant 0.000000e+00 : f32
    %73 = vector.broadcast %cst_58 : f32 to vector<1x352xf32>
    %c0_59 = arith.constant 0 : index
    %74 = memref.load %arg2[%c0_59] : memref<98xf32, #tpu.memory_space<smem>>
    %c49 = arith.constant 49 : index
    %75 = memref.load %arg2[%c49] : memref<98xf32, #tpu.memory_space<smem>>
    %c0_60 = arith.constant 0 : index
    %c0_61 = arith.constant 0 : index
    %76 = vector.load %arg4[%c0_60, %c0_61] : memref<1x490xf32, #tpu.memory_space<vmem>>, vector<1x352xf32>
    %77 = vector.broadcast %74 : f32 to vector<1x352xf32>
    %78 = arith.mulf %77, %76 : vector<1x352xf32>
    %c0_62 = arith.constant 0 : index
    %c0_63 = arith.constant 0 : index
    %79 = vector.load %arg5[%c0_62, %c0_63] : memref<1x490xf32, #tpu.memory_space<vmem>>, vector<1x352xf32>
    %80 = vector.broadcast %75 : f32 to vector<1x352xf32>
    %81 = arith.mulf %80, %79 : vector<1x352xf32>
    %82 = arith.addf %78, %81 : vector<1x352xf32>
    %83 = arith.addf %73, %82 : vector<1x352xf32>
    %c1 = arith.constant 1 : index
    %84 = memref.load %arg2[%c1] : memref<98xf32, #tpu.memory_space<smem>>
    %c50 = arith.constant 50 : index
    %85 = memref.load %arg2[%c50] : memref<98xf32, #tpu.memory_space<smem>>
    %c0_64 = arith.constant 0 : index
    %c1_65 = arith.constant 1 : index
    %86 = vector.load %arg4[%c0_64, %c1_65] : memref<1x490xf32, #tpu.memory_space<vmem>>, vector<1x352xf32>
    %87 = vector.broadcast %84 : f32 to vector<1x352xf32>
    %88 = arith.mulf %87, %86 : vector<1x352xf32>
    %c0_66 = arith.constant 0 : index
    %c1_67 = arith.constant 1 : index
    %89 = vector.load %arg5[%c0_66, %c1_67] : memref<1x490xf32, #tpu.memory_space<vmem>>, vector<1x352xf32>
    %90 = vector.broadcast %85 : f32 to vector<1x352xf32>
    %91 = arith.mulf %90, %89 : vector<1x352xf32>
    %92 = arith.addf %88, %91 : vector<1x352xf32>
    %93 = arith.addf %83, %92 : vector<1x352xf32>
    %c2 = arith.constant 2 : index
    %94 = memref.load %arg2[%c2] : memref<98xf32, #tpu.memory_space<smem>>
    %c51 = arith.constant 51 : index
    %95 = memref.load %arg2[%c51] : memref<98xf32, #tpu.memory_space<smem>>
    %c0_68 = arith.constant 0 : index
    %c2_69 = arith.constant 2 : index
    %96 = vector.load %arg4[%c0_68, %c2_69] : memref<1x490xf32, #tpu.memory_space<vmem>>, vector<1x352xf32>
    %97 = vector.broadcast %94 : f32 to vector<1x352xf32>
    %98 = arith.mulf %97, %96 : vector<1x352xf32>
    %c0_70 = arith.constant 0 : index
    %c2_71 = arith.constant 2 : index
    %99 = vector.load %arg5[%c0_70, %c2_71] : memref<1x490xf32, #tpu.memory_space<vmem>>, vector<1x352xf32>
    %100 = vector.broadcast %95 : f32 to vector<1x352xf32>
    %101 = arith.mulf %100, %99 : vector<1x352xf32>
    %102 = arith.addf %98, %101 : vector<1x352xf32>
    %103 = arith.addf %93, %102 : vector<1x352xf32>
    %c3 = arith.constant 3 : index
    %104 = memref.load %arg2[%c3] : memref<98xf32, #tpu.memory_space<smem>>
    %c52 = arith.constant 52 : index
    %105 = memref.load %arg2[%c52] : memref<98xf32, #tpu.memory_space<smem>>
    %c0_72 = arith.constant 0 : index
    %c3_73 = arith.constant 3 : index
    %106 = vector.load %arg4[%c0_72, %c3_73] : memref<1x490xf32, #tpu.memory_space<vmem>>, vector<1x352xf32>
    %107 = vector.broadcast %104 : f32 to vector<1x352xf32>
    %108 = arith.mulf %107, %106 : vector<1x352xf32>
    %c0_74 = arith.constant 0 : index
    %c3_75 = arith.constant 3 : index
    %109 = vector.load %arg5[%c0_74, %c3_75] : memref<1x490xf32, #tpu.memory_space<vmem>>, vector<1x352xf32>
    %110 = vector.broadcast %105 : f32 to vector<1x352xf32>
    %111 = arith.mulf %110, %109 : vector<1x352xf32>
    %112 = arith.addf %108, %111 : vector<1x352xf32>
    %113 = arith.addf %103, %112 : vector<1x352xf32>
    %c4 = arith.constant 4 : index
    %114 = memref.load %arg2[%c4] : memref<98xf32, #tpu.memory_space<smem>>
    %c53 = arith.constant 53 : index
    %115 = memref.load %arg2[%c53] : memref<98xf32, #tpu.memory_space<smem>>
    %c0_76 = arith.constant 0 : index
    %c4_77 = arith.constant 4 : index
    %116 = vector.load %arg4[%c0_76, %c4_77] : memref<1x490xf32, #tpu.memory_space<vmem>>, vector<1x352xf32>
    %117 = vector.broadcast %114 : f32 to vector<1x352xf32>
    %118 = arith.mulf %117, %116 : vector<1x352xf32>
    %c0_78 = arith.constant 0 : index
    %c4_79 = arith.constant 4 : index
    %119 = vector.load %arg5[%c0_78, %c4_79] : memref<1x490xf32, #tpu.memory_space<vmem>>, vector<1x352xf32>
    %120 = vector.broadcast %115 : f32 to vector<1x352xf32>
    %121 = arith.mulf %120, %119 : vector<1x352xf32>
    %122 = arith.addf %118, %121 : vector<1x352xf32>
    %123 = arith.addf %113, %122 : vector<1x352xf32>
    %c5 = arith.constant 5 : index
    %124 = memref.load %arg2[%c5] : memref<98xf32, #tpu.memory_space<smem>>
    %c54 = arith.constant 54 : index
    %125 = memref.load %arg2[%c54] : memref<98xf32, #tpu.memory_space<smem>>
    %c0_80 = arith.constant 0 : index
    %c5_81 = arith.constant 5 : index
    %126 = vector.load %arg4[%c0_80, %c5_81] : memref<1x490xf32, #tpu.memory_space<vmem>>, vector<1x352xf32>
    %127 = vector.broadcast %124 : f32 to vector<1x352xf32>
    %128 = arith.mulf %127, %126 : vector<1x352xf32>
    %c0_82 = arith.constant 0 : index
    %c5_83 = arith.constant 5 : index
    %129 = vector.load %arg5[%c0_82, %c5_83] : memref<1x490xf32, #tpu.memory_space<vmem>>, vector<1x352xf32>
    %130 = vector.broadcast %125 : f32 to vector<1x352xf32>
    %131 = arith.mulf %130, %129 : vector<1x352xf32>
    %132 = arith.addf %128, %131 : vector<1x352xf32>
    %133 = arith.addf %123, %132 : vector<1x352xf32>
    %c6 = arith.constant 6 : index
    %134 = memref.load %arg2[%c6] : memref<98xf32, #tpu.memory_space<smem>>
    %c55 = arith.constant 55 : index
    %135 = memref.load %arg2[%c55] : memref<98xf32, #tpu.memory_space<smem>>
    %c0_84 = arith.constant 0 : index
    %c6_85 = arith.constant 6 : index
    %136 = vector.load %arg4[%c0_84, %c6_85] : memref<1x490xf32, #tpu.memory_space<vmem>>, vector<1x352xf32>
    %137 = vector.broadcast %134 : f32 to vector<1x352xf32>
    %138 = arith.mulf %137, %136 : vector<1x352xf32>
    %c0_86 = arith.constant 0 : index
    %c6_87 = arith.constant 6 : index
    %139 = vector.load %arg5[%c0_86, %c6_87] : memref<1x490xf32, #tpu.memory_space<vmem>>, vector<1x352xf32>
    %140 = vector.broadcast %135 : f32 to vector<1x352xf32>
    %141 = arith.mulf %140, %139 : vector<1x352xf32>
    %142 = arith.addf %138, %141 : vector<1x352xf32>
    %143 = arith.addf %133, %142 : vector<1x352xf32>
    %c7 = arith.constant 7 : index
    %144 = memref.load %arg2[%c7] : memref<98xf32, #tpu.memory_space<smem>>
    %c56 = arith.constant 56 : index
    %145 = memref.load %arg2[%c56] : memref<98xf32, #tpu.memory_space<smem>>
    %c0_88 = arith.constant 0 : index
    %c22 = arith.constant 22 : index
    %146 = vector.load %arg4[%c0_88, %c22] : memref<1x490xf32, #tpu.memory_space<vmem>>, vector<1x352xf32>
    %147 = vector.broadcast %144 : f32 to vector<1x352xf32>
    %148 = arith.mulf %147, %146 : vector<1x352xf32>
    %c0_89 = arith.constant 0 : index
    %c22_90 = arith.constant 22 : index
    %149 = vector.load %arg5[%c0_89, %c22_90] : memref<1x490xf32, #tpu.memory_space<vmem>>, vector<1x352xf32>
    %150 = vector.broadcast %145 : f32 to vector<1x352xf32>
    %151 = arith.mulf %150, %149 : vector<1x352xf32>
    %152 = arith.addf %148, %151 : vector<1x352xf32>
    %153 = arith.addf %143, %152 : vector<1x352xf32>
    %c8 = arith.constant 8 : index
    %154 = memref.load %arg2[%c8] : memref<98xf32, #tpu.memory_space<smem>>
    %c57 = arith.constant 57 : index
    %155 = memref.load %arg2[%c57] : memref<98xf32, #tpu.memory_space<smem>>
    %c0_91 = arith.constant 0 : index
    %c23 = arith.constant 23 : index
    %156 = vector.load %arg4[%c0_91, %c23] : memref<1x490xf32, #tpu.memory_space<vmem>>, vector<1x352xf32>
    %157 = vector.broadcast %154 : f32 to vector<1x352xf32>
    %158 = arith.mulf %157, %156 : vector<1x352xf32>
    %c0_92 = arith.constant 0 : index
    %c23_93 = arith.constant 23 : index
    %159 = vector.load %arg5[%c0_92, %c23_93] : memref<1x490xf32, #tpu.memory_space<vmem>>, vector<1x352xf32>
    %160 = vector.broadcast %155 : f32 to vector<1x352xf32>
    %161 = arith.mulf %160, %159 : vector<1x352xf32>
    %162 = arith.addf %158, %161 : vector<1x352xf32>
    %163 = arith.addf %153, %162 : vector<1x352xf32>
    %c9 = arith.constant 9 : index
    %164 = memref.load %arg2[%c9] : memref<98xf32, #tpu.memory_space<smem>>
    %c58 = arith.constant 58 : index
    %165 = memref.load %arg2[%c58] : memref<98xf32, #tpu.memory_space<smem>>
    %c0_94 = arith.constant 0 : index
    %c24 = arith.constant 24 : index
    %166 = vector.load %arg4[%c0_94, %c24] : memref<1x490xf32, #tpu.memory_space<vmem>>, vector<1x352xf32>
    %167 = vector.broadcast %164 : f32 to vector<1x352xf32>
    %168 = arith.mulf %167, %166 : vector<1x352xf32>
    %c0_95 = arith.constant 0 : index
    %c24_96 = arith.constant 24 : index
    %169 = vector.load %arg5[%c0_95, %c24_96] : memref<1x490xf32, #tpu.memory_space<vmem>>, vector<1x352xf32>
    %170 = vector.broadcast %165 : f32 to vector<1x352xf32>
    %171 = arith.mulf %170, %169 : vector<1x352xf32>
    %172 = arith.addf %168, %171 : vector<1x352xf32>
    %173 = arith.addf %163, %172 : vector<1x352xf32>
    %c10 = arith.constant 10 : index
    %174 = memref.load %arg2[%c10] : memref<98xf32, #tpu.memory_space<smem>>
    %c59 = arith.constant 59 : index
    %175 = memref.load %arg2[%c59] : memref<98xf32, #tpu.memory_space<smem>>
    %c0_97 = arith.constant 0 : index
    %c25 = arith.constant 25 : index
    %176 = vector.load %arg4[%c0_97, %c25] : memref<1x490xf32, #tpu.memory_space<vmem>>, vector<1x352xf32>
    %177 = vector.broadcast %174 : f32 to vector<1x352xf32>
    %178 = arith.mulf %177, %176 : vector<1x352xf32>
    %c0_98 = arith.constant 0 : index
    %c25_99 = arith.constant 25 : index
    %179 = vector.load %arg5[%c0_98, %c25_99] : memref<1x490xf32, #tpu.memory_space<vmem>>, vector<1x352xf32>
    %180 = vector.broadcast %175 : f32 to vector<1x352xf32>
    %181 = arith.mulf %180, %179 : vector<1x352xf32>
    %182 = arith.addf %178, %181 : vector<1x352xf32>
    %183 = arith.addf %173, %182 : vector<1x352xf32>
    %c11 = arith.constant 11 : index
    %184 = memref.load %arg2[%c11] : memref<98xf32, #tpu.memory_space<smem>>
    %c60 = arith.constant 60 : index
    %185 = memref.load %arg2[%c60] : memref<98xf32, #tpu.memory_space<smem>>
    %c0_100 = arith.constant 0 : index
    %c26 = arith.constant 26 : index
    %186 = vector.load %arg4[%c0_100, %c26] : memref<1x490xf32, #tpu.memory_space<vmem>>, vector<1x352xf32>
    %187 = vector.broadcast %184 : f32 to vector<1x352xf32>
    %188 = arith.mulf %187, %186 : vector<1x352xf32>
    %c0_101 = arith.constant 0 : index
    %c26_102 = arith.constant 26 : index
    %189 = vector.load %arg5[%c0_101, %c26_102] : memref<1x490xf32, #tpu.memory_space<vmem>>, vector<1x352xf32>
    %190 = vector.broadcast %185 : f32 to vector<1x352xf32>
    %191 = arith.mulf %190, %189 : vector<1x352xf32>
    %192 = arith.addf %188, %191 : vector<1x352xf32>
    %193 = arith.addf %183, %192 : vector<1x352xf32>
    %c12 = arith.constant 12 : index
    %194 = memref.load %arg2[%c12] : memref<98xf32, #tpu.memory_space<smem>>
    %c61 = arith.constant 61 : index
    %195 = memref.load %arg2[%c61] : memref<98xf32, #tpu.memory_space<smem>>
    %c0_103 = arith.constant 0 : index
    %c27 = arith.constant 27 : index
    %196 = vector.load %arg4[%c0_103, %c27] : memref<1x490xf32, #tpu.memory_space<vmem>>, vector<1x352xf32>
    %197 = vector.broadcast %194 : f32 to vector<1x352xf32>
    %198 = arith.mulf %197, %196 : vector<1x352xf32>
    %c0_104 = arith.constant 0 : index
    %c27_105 = arith.constant 27 : index
    %199 = vector.load %arg5[%c0_104, %c27_105] : memref<1x490xf32, #tpu.memory_space<vmem>>, vector<1x352xf32>
    %200 = vector.broadcast %195 : f32 to vector<1x352xf32>
    %201 = arith.mulf %200, %199 : vector<1x352xf32>
    %202 = arith.addf %198, %201 : vector<1x352xf32>
    %203 = arith.addf %193, %202 : vector<1x352xf32>
    %c13 = arith.constant 13 : index
    %204 = memref.load %arg2[%c13] : memref<98xf32, #tpu.memory_space<smem>>
    %c62 = arith.constant 62 : index
    %205 = memref.load %arg2[%c62] : memref<98xf32, #tpu.memory_space<smem>>
    %c0_106 = arith.constant 0 : index
    %c28 = arith.constant 28 : index
    %206 = vector.load %arg4[%c0_106, %c28] : memref<1x490xf32, #tpu.memory_space<vmem>>, vector<1x352xf32>
    %207 = vector.broadcast %204 : f32 to vector<1x352xf32>
    %208 = arith.mulf %207, %206 : vector<1x352xf32>
    %c0_107 = arith.constant 0 : index
    %c28_108 = arith.constant 28 : index
    %209 = vector.load %arg5[%c0_107, %c28_108] : memref<1x490xf32, #tpu.memory_space<vmem>>, vector<1x352xf32>
    %210 = vector.broadcast %205 : f32 to vector<1x352xf32>
    %211 = arith.mulf %210, %209 : vector<1x352xf32>
    %212 = arith.addf %208, %211 : vector<1x352xf32>
    %213 = arith.addf %203, %212 : vector<1x352xf32>
    %c14 = arith.constant 14 : index
    %214 = memref.load %arg2[%c14] : memref<98xf32, #tpu.memory_space<smem>>
    %c63 = arith.constant 63 : index
    %215 = memref.load %arg2[%c63] : memref<98xf32, #tpu.memory_space<smem>>
    %c0_109 = arith.constant 0 : index
    %c44 = arith.constant 44 : index
    %216 = vector.load %arg4[%c0_109, %c44] : memref<1x490xf32, #tpu.memory_space<vmem>>, vector<1x352xf32>
    %217 = vector.broadcast %214 : f32 to vector<1x352xf32>
    %218 = arith.mulf %217, %216 : vector<1x352xf32>
    %c0_110 = arith.constant 0 : index
    %c44_111 = arith.constant 44 : index
    %219 = vector.load %arg5[%c0_110, %c44_111] : memref<1x490xf32, #tpu.memory_space<vmem>>, vector<1x352xf32>
    %220 = vector.broadcast %215 : f32 to vector<1x352xf32>
    %221 = arith.mulf %220, %219 : vector<1x352xf32>
    %222 = arith.addf %218, %221 : vector<1x352xf32>
    %223 = arith.addf %213, %222 : vector<1x352xf32>
    %c15 = arith.constant 15 : index
    %224 = memref.load %arg2[%c15] : memref<98xf32, #tpu.memory_space<smem>>
    %c64 = arith.constant 64 : index
    %225 = memref.load %arg2[%c64] : memref<98xf32, #tpu.memory_space<smem>>
    %c0_112 = arith.constant 0 : index
    %c45 = arith.constant 45 : index
    %226 = vector.load %arg4[%c0_112, %c45] : memref<1x490xf32, #tpu.memory_space<vmem>>, vector<1x352xf32>
    %227 = vector.broadcast %224 : f32 to vector<1x352xf32>
    %228 = arith.mulf %227, %226 : vector<1x352xf32>
    %c0_113 = arith.constant 0 : index
    %c45_114 = arith.constant 45 : index
    %229 = vector.load %arg5[%c0_113, %c45_114] : memref<1x490xf32, #tpu.memory_space<vmem>>, vector<1x352xf32>
    %230 = vector.broadcast %225 : f32 to vector<1x352xf32>
    %231 = arith.mulf %230, %229 : vector<1x352xf32>
    %232 = arith.addf %228, %231 : vector<1x352xf32>
    %233 = arith.addf %223, %232 : vector<1x352xf32>
    %c16 = arith.constant 16 : index
    %234 = memref.load %arg2[%c16] : memref<98xf32, #tpu.memory_space<smem>>
    %c65 = arith.constant 65 : index
    %235 = memref.load %arg2[%c65] : memref<98xf32, #tpu.memory_space<smem>>
    %c0_115 = arith.constant 0 : index
    %c46 = arith.constant 46 : index
    %236 = vector.load %arg4[%c0_115, %c46] : memref<1x490xf32, #tpu.memory_space<vmem>>, vector<1x352xf32>
    %237 = vector.broadcast %234 : f32 to vector<1x352xf32>
    %238 = arith.mulf %237, %236 : vector<1x352xf32>
    %c0_116 = arith.constant 0 : index
    %c46_117 = arith.constant 46 : index
    %239 = vector.load %arg5[%c0_116, %c46_117] : memref<1x490xf32, #tpu.memory_space<vmem>>, vector<1x352xf32>
    %240 = vector.broadcast %235 : f32 to vector<1x352xf32>
    %241 = arith.mulf %240, %239 : vector<1x352xf32>
    %242 = arith.addf %238, %241 : vector<1x352xf32>
    %243 = arith.addf %233, %242 : vector<1x352xf32>
    %c17 = arith.constant 17 : index
    %244 = memref.load %arg2[%c17] : memref<98xf32, #tpu.memory_space<smem>>
    %c66 = arith.constant 66 : index
    %245 = memref.load %arg2[%c66] : memref<98xf32, #tpu.memory_space<smem>>
    %c0_118 = arith.constant 0 : index
    %c47 = arith.constant 47 : index
    %246 = vector.load %arg4[%c0_118, %c47] : memref<1x490xf32, #tpu.memory_space<vmem>>, vector<1x352xf32>
    %247 = vector.broadcast %244 : f32 to vector<1x352xf32>
    %248 = arith.mulf %247, %246 : vector<1x352xf32>
    %c0_119 = arith.constant 0 : index
    %c47_120 = arith.constant 47 : index
    %249 = vector.load %arg5[%c0_119, %c47_120] : memref<1x490xf32, #tpu.memory_space<vmem>>, vector<1x352xf32>
    %250 = vector.broadcast %245 : f32 to vector<1x352xf32>
    %251 = arith.mulf %250, %249 : vector<1x352xf32>
    %252 = arith.addf %248, %251 : vector<1x352xf32>
    %253 = arith.addf %243, %252 : vector<1x352xf32>
    %c18 = arith.constant 18 : index
    %254 = memref.load %arg2[%c18] : memref<98xf32, #tpu.memory_space<smem>>
    %c67 = arith.constant 67 : index
    %255 = memref.load %arg2[%c67] : memref<98xf32, #tpu.memory_space<smem>>
    %c0_121 = arith.constant 0 : index
    %c48 = arith.constant 48 : index
    %256 = vector.load %arg4[%c0_121, %c48] : memref<1x490xf32, #tpu.memory_space<vmem>>, vector<1x352xf32>
    %257 = vector.broadcast %254 : f32 to vector<1x352xf32>
    %258 = arith.mulf %257, %256 : vector<1x352xf32>
    %c0_122 = arith.constant 0 : index
    %c48_123 = arith.constant 48 : index
    %259 = vector.load %arg5[%c0_122, %c48_123] : memref<1x490xf32, #tpu.memory_space<vmem>>, vector<1x352xf32>
    %260 = vector.broadcast %255 : f32 to vector<1x352xf32>
    %261 = arith.mulf %260, %259 : vector<1x352xf32>
    %262 = arith.addf %258, %261 : vector<1x352xf32>
    %263 = arith.addf %253, %262 : vector<1x352xf32>
    %c19 = arith.constant 19 : index
    %264 = memref.load %arg2[%c19] : memref<98xf32, #tpu.memory_space<smem>>
    %c68 = arith.constant 68 : index
    %265 = memref.load %arg2[%c68] : memref<98xf32, #tpu.memory_space<smem>>
    %c0_124 = arith.constant 0 : index
    %c49_125 = arith.constant 49 : index
    %266 = vector.load %arg4[%c0_124, %c49_125] : memref<1x490xf32, #tpu.memory_space<vmem>>, vector<1x352xf32>
    %267 = vector.broadcast %264 : f32 to vector<1x352xf32>
    %268 = arith.mulf %267, %266 : vector<1x352xf32>
    %c0_126 = arith.constant 0 : index
    %c49_127 = arith.constant 49 : index
    %269 = vector.load %arg5[%c0_126, %c49_127] : memref<1x490xf32, #tpu.memory_space<vmem>>, vector<1x352xf32>
    %270 = vector.broadcast %265 : f32 to vector<1x352xf32>
    %271 = arith.mulf %270, %269 : vector<1x352xf32>
    %272 = arith.addf %268, %271 : vector<1x352xf32>
    %273 = arith.addf %263, %272 : vector<1x352xf32>
    %c20 = arith.constant 20 : index
    %274 = memref.load %arg2[%c20] : memref<98xf32, #tpu.memory_space<smem>>
    %c69_128 = arith.constant 69 : index
    %275 = memref.load %arg2[%c69_128] : memref<98xf32, #tpu.memory_space<smem>>
    %c0_129 = arith.constant 0 : index
    %c50_130 = arith.constant 50 : index
    %276 = vector.load %arg4[%c0_129, %c50_130] : memref<1x490xf32, #tpu.memory_space<vmem>>, vector<1x352xf32>
    %277 = vector.broadcast %274 : f32 to vector<1x352xf32>
    %278 = arith.mulf %277, %276 : vector<1x352xf32>
    %c0_131 = arith.constant 0 : index
    %c50_132 = arith.constant 50 : index
    %279 = vector.load %arg5[%c0_131, %c50_132] : memref<1x490xf32, #tpu.memory_space<vmem>>, vector<1x352xf32>
    %280 = vector.broadcast %275 : f32 to vector<1x352xf32>
    %281 = arith.mulf %280, %279 : vector<1x352xf32>
    %282 = arith.addf %278, %281 : vector<1x352xf32>
    %283 = arith.addf %273, %282 : vector<1x352xf32>
    %c21 = arith.constant 21 : index
    %284 = memref.load %arg2[%c21] : memref<98xf32, #tpu.memory_space<smem>>
    %c70 = arith.constant 70 : index
    %285 = memref.load %arg2[%c70] : memref<98xf32, #tpu.memory_space<smem>>
    %c0_133 = arith.constant 0 : index
    %c66_134 = arith.constant 66 : index
    %286 = vector.load %arg4[%c0_133, %c66_134] : memref<1x490xf32, #tpu.memory_space<vmem>>, vector<1x352xf32>
    %287 = vector.broadcast %284 : f32 to vector<1x352xf32>
    %288 = arith.mulf %287, %286 : vector<1x352xf32>
    %c0_135 = arith.constant 0 : index
    %c66_136 = arith.constant 66 : index
    %289 = vector.load %arg5[%c0_135, %c66_136] : memref<1x490xf32, #tpu.memory_space<vmem>>, vector<1x352xf32>
    %290 = vector.broadcast %285 : f32 to vector<1x352xf32>
    %291 = arith.mulf %290, %289 : vector<1x352xf32>
    %292 = arith.addf %288, %291 : vector<1x352xf32>
    %293 = arith.addf %283, %292 : vector<1x352xf32>
    %c22_137 = arith.constant 22 : index
    %294 = memref.load %arg2[%c22_137] : memref<98xf32, #tpu.memory_space<smem>>
    %c71 = arith.constant 71 : index
    %295 = memref.load %arg2[%c71] : memref<98xf32, #tpu.memory_space<smem>>
    %c0_138 = arith.constant 0 : index
    %c67_139 = arith.constant 67 : index
    %296 = vector.load %arg4[%c0_138, %c67_139] : memref<1x490xf32, #tpu.memory_space<vmem>>, vector<1x352xf32>
    %297 = vector.broadcast %294 : f32 to vector<1x352xf32>
    %298 = arith.mulf %297, %296 : vector<1x352xf32>
    %c0_140 = arith.constant 0 : index
    %c67_141 = arith.constant 67 : index
    %299 = vector.load %arg5[%c0_140, %c67_141] : memref<1x490xf32, #tpu.memory_space<vmem>>, vector<1x352xf32>
    %300 = vector.broadcast %295 : f32 to vector<1x352xf32>
    %301 = arith.mulf %300, %299 : vector<1x352xf32>
    %302 = arith.addf %298, %301 : vector<1x352xf32>
    %303 = arith.addf %293, %302 : vector<1x352xf32>
    %c23_142 = arith.constant 23 : index
    %304 = memref.load %arg2[%c23_142] : memref<98xf32, #tpu.memory_space<smem>>
    %c72 = arith.constant 72 : index
    %305 = memref.load %arg2[%c72] : memref<98xf32, #tpu.memory_space<smem>>
    %c0_143 = arith.constant 0 : index
    %c68_144 = arith.constant 68 : index
    %306 = vector.load %arg4[%c0_143, %c68_144] : memref<1x490xf32, #tpu.memory_space<vmem>>, vector<1x352xf32>
    %307 = vector.broadcast %304 : f32 to vector<1x352xf32>
    %308 = arith.mulf %307, %306 : vector<1x352xf32>
    %c0_145 = arith.constant 0 : index
    %c68_146 = arith.constant 68 : index
    %309 = vector.load %arg5[%c0_145, %c68_146] : memref<1x490xf32, #tpu.memory_space<vmem>>, vector<1x352xf32>
    %310 = vector.broadcast %305 : f32 to vector<1x352xf32>
    %311 = arith.mulf %310, %309 : vector<1x352xf32>
    %312 = arith.addf %308, %311 : vector<1x352xf32>
    %313 = arith.addf %303, %312 : vector<1x352xf32>
    %c24_147 = arith.constant 24 : index
    %314 = memref.load %arg2[%c24_147] : memref<98xf32, #tpu.memory_space<smem>>
    %c73 = arith.constant 73 : index
    %315 = memref.load %arg2[%c73] : memref<98xf32, #tpu.memory_space<smem>>
    %c0_148 = arith.constant 0 : index
    %c69_149 = arith.constant 69 : index
    %316 = vector.load %arg4[%c0_148, %c69_149] : memref<1x490xf32, #tpu.memory_space<vmem>>, vector<1x352xf32>
    %317 = vector.broadcast %314 : f32 to vector<1x352xf32>
    %318 = arith.mulf %317, %316 : vector<1x352xf32>
    %c0_150 = arith.constant 0 : index
    %c69_151 = arith.constant 69 : index
    %319 = vector.load %arg5[%c0_150, %c69_151] : memref<1x490xf32, #tpu.memory_space<vmem>>, vector<1x352xf32>
    %320 = vector.broadcast %315 : f32 to vector<1x352xf32>
    %321 = arith.mulf %320, %319 : vector<1x352xf32>
    %322 = arith.addf %318, %321 : vector<1x352xf32>
    %323 = arith.addf %313, %322 : vector<1x352xf32>
    %c25_152 = arith.constant 25 : index
    %324 = memref.load %arg2[%c25_152] : memref<98xf32, #tpu.memory_space<smem>>
    %c74 = arith.constant 74 : index
    %325 = memref.load %arg2[%c74] : memref<98xf32, #tpu.memory_space<smem>>
    %c0_153 = arith.constant 0 : index
    %c70_154 = arith.constant 70 : index
    %326 = vector.load %arg4[%c0_153, %c70_154] : memref<1x490xf32, #tpu.memory_space<vmem>>, vector<1x352xf32>
    %327 = vector.broadcast %324 : f32 to vector<1x352xf32>
    %328 = arith.mulf %327, %326 : vector<1x352xf32>
    %c0_155 = arith.constant 0 : index
    %c70_156 = arith.constant 70 : index
    %329 = vector.load %arg5[%c0_155, %c70_156] : memref<1x490xf32, #tpu.memory_space<vmem>>, vector<1x352xf32>
    %330 = vector.broadcast %325 : f32 to vector<1x352xf32>
    %331 = arith.mulf %330, %329 : vector<1x352xf32>
    %332 = arith.addf %328, %331 : vector<1x352xf32>
    %333 = arith.addf %323, %332 : vector<1x352xf32>
    %c26_157 = arith.constant 26 : index
    %334 = memref.load %arg2[%c26_157] : memref<98xf32, #tpu.memory_space<smem>>
    %c75 = arith.constant 75 : index
    %335 = memref.load %arg2[%c75] : memref<98xf32, #tpu.memory_space<smem>>
    %c0_158 = arith.constant 0 : index
    %c71_159 = arith.constant 71 : index
    %336 = vector.load %arg4[%c0_158, %c71_159] : memref<1x490xf32, #tpu.memory_space<vmem>>, vector<1x352xf32>
    %337 = vector.broadcast %334 : f32 to vector<1x352xf32>
    %338 = arith.mulf %337, %336 : vector<1x352xf32>
    %c0_160 = arith.constant 0 : index
    %c71_161 = arith.constant 71 : index
    %339 = vector.load %arg5[%c0_160, %c71_161] : memref<1x490xf32, #tpu.memory_space<vmem>>, vector<1x352xf32>
    %340 = vector.broadcast %335 : f32 to vector<1x352xf32>
    %341 = arith.mulf %340, %339 : vector<1x352xf32>
    %342 = arith.addf %338, %341 : vector<1x352xf32>
    %343 = arith.addf %333, %342 : vector<1x352xf32>
    %c27_162 = arith.constant 27 : index
    %344 = memref.load %arg2[%c27_162] : memref<98xf32, #tpu.memory_space<smem>>
    %c76 = arith.constant 76 : index
    %345 = memref.load %arg2[%c76] : memref<98xf32, #tpu.memory_space<smem>>
    %c0_163 = arith.constant 0 : index
    %c72_164 = arith.constant 72 : index
    %346 = vector.load %arg4[%c0_163, %c72_164] : memref<1x490xf32, #tpu.memory_space<vmem>>, vector<1x352xf32>
    %347 = vector.broadcast %344 : f32 to vector<1x352xf32>
    %348 = arith.mulf %347, %346 : vector<1x352xf32>
    %c0_165 = arith.constant 0 : index
    %c72_166 = arith.constant 72 : index
    %349 = vector.load %arg5[%c0_165, %c72_166] : memref<1x490xf32, #tpu.memory_space<vmem>>, vector<1x352xf32>
    %350 = vector.broadcast %345 : f32 to vector<1x352xf32>
    %351 = arith.mulf %350, %349 : vector<1x352xf32>
    %352 = arith.addf %348, %351 : vector<1x352xf32>
    %353 = arith.addf %343, %352 : vector<1x352xf32>
    %c28_167 = arith.constant 28 : index
    %354 = memref.load %arg2[%c28_167] : memref<98xf32, #tpu.memory_space<smem>>
    %c77 = arith.constant 77 : index
    %355 = memref.load %arg2[%c77] : memref<98xf32, #tpu.memory_space<smem>>
    %c0_168 = arith.constant 0 : index
    %c88 = arith.constant 88 : index
    %356 = vector.load %arg4[%c0_168, %c88] : memref<1x490xf32, #tpu.memory_space<vmem>>, vector<1x352xf32>
    %357 = vector.broadcast %354 : f32 to vector<1x352xf32>
    %358 = arith.mulf %357, %356 : vector<1x352xf32>
    %c0_169 = arith.constant 0 : index
    %c88_170 = arith.constant 88 : index
    %359 = vector.load %arg5[%c0_169, %c88_170] : memref<1x490xf32, #tpu.memory_space<vmem>>, vector<1x352xf32>
    %360 = vector.broadcast %355 : f32 to vector<1x352xf32>
    %361 = arith.mulf %360, %359 : vector<1x352xf32>
    %362 = arith.addf %358, %361 : vector<1x352xf32>
    %363 = arith.addf %353, %362 : vector<1x352xf32>
    %c29 = arith.constant 29 : index
    %364 = memref.load %arg2[%c29] : memref<98xf32, #tpu.memory_space<smem>>
    %c78 = arith.constant 78 : index
    %365 = memref.load %arg2[%c78] : memref<98xf32, #tpu.memory_space<smem>>
    %c0_171 = arith.constant 0 : index
    %c89 = arith.constant 89 : index
    %366 = vector.load %arg4[%c0_171, %c89] : memref<1x490xf32, #tpu.memory_space<vmem>>, vector<1x352xf32>
    %367 = vector.broadcast %364 : f32 to vector<1x352xf32>
    %368 = arith.mulf %367, %366 : vector<1x352xf32>
    %c0_172 = arith.constant 0 : index
    %c89_173 = arith.constant 89 : index
    %369 = vector.load %arg5[%c0_172, %c89_173] : memref<1x490xf32, #tpu.memory_space<vmem>>, vector<1x352xf32>
    %370 = vector.broadcast %365 : f32 to vector<1x352xf32>
    %371 = arith.mulf %370, %369 : vector<1x352xf32>
    %372 = arith.addf %368, %371 : vector<1x352xf32>
    %373 = arith.addf %363, %372 : vector<1x352xf32>
    %c30 = arith.constant 30 : index
    %374 = memref.load %arg2[%c30] : memref<98xf32, #tpu.memory_space<smem>>
    %c79 = arith.constant 79 : index
    %375 = memref.load %arg2[%c79] : memref<98xf32, #tpu.memory_space<smem>>
    %c0_174 = arith.constant 0 : index
    %c90 = arith.constant 90 : index
    %376 = vector.load %arg4[%c0_174, %c90] : memref<1x490xf32, #tpu.memory_space<vmem>>, vector<1x352xf32>
    %377 = vector.broadcast %374 : f32 to vector<1x352xf32>
    %378 = arith.mulf %377, %376 : vector<1x352xf32>
    %c0_175 = arith.constant 0 : index
    %c90_176 = arith.constant 90 : index
    %379 = vector.load %arg5[%c0_175, %c90_176] : memref<1x490xf32, #tpu.memory_space<vmem>>, vector<1x352xf32>
    %380 = vector.broadcast %375 : f32 to vector<1x352xf32>
    %381 = arith.mulf %380, %379 : vector<1x352xf32>
    %382 = arith.addf %378, %381 : vector<1x352xf32>
    %383 = arith.addf %373, %382 : vector<1x352xf32>
    %c31 = arith.constant 31 : index
    %384 = memref.load %arg2[%c31] : memref<98xf32, #tpu.memory_space<smem>>
    %c80 = arith.constant 80 : index
    %385 = memref.load %arg2[%c80] : memref<98xf32, #tpu.memory_space<smem>>
    %c0_177 = arith.constant 0 : index
    %c91_178 = arith.constant 91 : index
    %386 = vector.load %arg4[%c0_177, %c91_178] : memref<1x490xf32, #tpu.memory_space<vmem>>, vector<1x352xf32>
    %387 = vector.broadcast %384 : f32 to vector<1x352xf32>
    %388 = arith.mulf %387, %386 : vector<1x352xf32>
    %c0_179 = arith.constant 0 : index
    %c91_180 = arith.constant 91 : index
    %389 = vector.load %arg5[%c0_179, %c91_180] : memref<1x490xf32, #tpu.memory_space<vmem>>, vector<1x352xf32>
    %390 = vector.broadcast %385 : f32 to vector<1x352xf32>
    %391 = arith.mulf %390, %389 : vector<1x352xf32>
    %392 = arith.addf %388, %391 : vector<1x352xf32>
    %393 = arith.addf %383, %392 : vector<1x352xf32>
    %c32 = arith.constant 32 : index
    %394 = memref.load %arg2[%c32] : memref<98xf32, #tpu.memory_space<smem>>
    %c81 = arith.constant 81 : index
    %395 = memref.load %arg2[%c81] : memref<98xf32, #tpu.memory_space<smem>>
    %c0_181 = arith.constant 0 : index
    %c92 = arith.constant 92 : index
    %396 = vector.load %arg4[%c0_181, %c92] : memref<1x490xf32, #tpu.memory_space<vmem>>, vector<1x352xf32>
    %397 = vector.broadcast %394 : f32 to vector<1x352xf32>
    %398 = arith.mulf %397, %396 : vector<1x352xf32>
    %c0_182 = arith.constant 0 : index
    %c92_183 = arith.constant 92 : index
    %399 = vector.load %arg5[%c0_182, %c92_183] : memref<1x490xf32, #tpu.memory_space<vmem>>, vector<1x352xf32>
    %400 = vector.broadcast %395 : f32 to vector<1x352xf32>
    %401 = arith.mulf %400, %399 : vector<1x352xf32>
    %402 = arith.addf %398, %401 : vector<1x352xf32>
    %403 = arith.addf %393, %402 : vector<1x352xf32>
    %c33 = arith.constant 33 : index
    %404 = memref.load %arg2[%c33] : memref<98xf32, #tpu.memory_space<smem>>
    %c82 = arith.constant 82 : index
    %405 = memref.load %arg2[%c82] : memref<98xf32, #tpu.memory_space<smem>>
    %c0_184 = arith.constant 0 : index
    %c93 = arith.constant 93 : index
    %406 = vector.load %arg4[%c0_184, %c93] : memref<1x490xf32, #tpu.memory_space<vmem>>, vector<1x352xf32>
    %407 = vector.broadcast %404 : f32 to vector<1x352xf32>
    %408 = arith.mulf %407, %406 : vector<1x352xf32>
    %c0_185 = arith.constant 0 : index
    %c93_186 = arith.constant 93 : index
    %409 = vector.load %arg5[%c0_185, %c93_186] : memref<1x490xf32, #tpu.memory_space<vmem>>, vector<1x352xf32>
    %410 = vector.broadcast %405 : f32 to vector<1x352xf32>
    %411 = arith.mulf %410, %409 : vector<1x352xf32>
    %412 = arith.addf %408, %411 : vector<1x352xf32>
    %413 = arith.addf %403, %412 : vector<1x352xf32>
    %c34 = arith.constant 34 : index
    %414 = memref.load %arg2[%c34] : memref<98xf32, #tpu.memory_space<smem>>
    %c83 = arith.constant 83 : index
    %415 = memref.load %arg2[%c83] : memref<98xf32, #tpu.memory_space<smem>>
    %c0_187 = arith.constant 0 : index
    %c94 = arith.constant 94 : index
    %416 = vector.load %arg4[%c0_187, %c94] : memref<1x490xf32, #tpu.memory_space<vmem>>, vector<1x352xf32>
    %417 = vector.broadcast %414 : f32 to vector<1x352xf32>
    %418 = arith.mulf %417, %416 : vector<1x352xf32>
    %c0_188 = arith.constant 0 : index
    %c94_189 = arith.constant 94 : index
    %419 = vector.load %arg5[%c0_188, %c94_189] : memref<1x490xf32, #tpu.memory_space<vmem>>, vector<1x352xf32>
    %420 = vector.broadcast %415 : f32 to vector<1x352xf32>
    %421 = arith.mulf %420, %419 : vector<1x352xf32>
    %422 = arith.addf %418, %421 : vector<1x352xf32>
    %423 = arith.addf %413, %422 : vector<1x352xf32>
    %c35 = arith.constant 35 : index
    %424 = memref.load %arg2[%c35] : memref<98xf32, #tpu.memory_space<smem>>
    %c84 = arith.constant 84 : index
    %425 = memref.load %arg2[%c84] : memref<98xf32, #tpu.memory_space<smem>>
    %c0_190 = arith.constant 0 : index
    %c110 = arith.constant 110 : index
    %426 = vector.load %arg4[%c0_190, %c110] : memref<1x490xf32, #tpu.memory_space<vmem>>, vector<1x352xf32>
    %427 = vector.broadcast %424 : f32 to vector<1x352xf32>
    %428 = arith.mulf %427, %426 : vector<1x352xf32>
    %c0_191 = arith.constant 0 : index
    %c110_192 = arith.constant 110 : index
    %429 = vector.load %arg5[%c0_191, %c110_192] : memref<1x490xf32, #tpu.memory_space<vmem>>, vector<1x352xf32>
    %430 = vector.broadcast %425 : f32 to vector<1x352xf32>
    %431 = arith.mulf %430, %429 : vector<1x352xf32>
    %432 = arith.addf %428, %431 : vector<1x352xf32>
    %433 = arith.addf %423, %432 : vector<1x352xf32>
    %c36 = arith.constant 36 : index
    %434 = memref.load %arg2[%c36] : memref<98xf32, #tpu.memory_space<smem>>
    %c85 = arith.constant 85 : index
    %435 = memref.load %arg2[%c85] : memref<98xf32, #tpu.memory_space<smem>>
    %c0_193 = arith.constant 0 : index
    %c111 = arith.constant 111 : index
    %436 = vector.load %arg4[%c0_193, %c111] : memref<1x490xf32, #tpu.memory_space<vmem>>, vector<1x352xf32>
    %437 = vector.broadcast %434 : f32 to vector<1x352xf32>
    %438 = arith.mulf %437, %436 : vector<1x352xf32>
    %c0_194 = arith.constant 0 : index
    %c111_195 = arith.constant 111 : index
    %439 = vector.load %arg5[%c0_194, %c111_195] : memref<1x490xf32, #tpu.memory_space<vmem>>, vector<1x352xf32>
    %440 = vector.broadcast %435 : f32 to vector<1x352xf32>
    %441 = arith.mulf %440, %439 : vector<1x352xf32>
    %442 = arith.addf %438, %441 : vector<1x352xf32>
    %443 = arith.addf %433, %442 : vector<1x352xf32>
    %c37 = arith.constant 37 : index
    %444 = memref.load %arg2[%c37] : memref<98xf32, #tpu.memory_space<smem>>
    %c86 = arith.constant 86 : index
    %445 = memref.load %arg2[%c86] : memref<98xf32, #tpu.memory_space<smem>>
    %c0_196 = arith.constant 0 : index
    %c112 = arith.constant 112 : index
    %446 = vector.load %arg4[%c0_196, %c112] : memref<1x490xf32, #tpu.memory_space<vmem>>, vector<1x352xf32>
    %447 = vector.broadcast %444 : f32 to vector<1x352xf32>
    %448 = arith.mulf %447, %446 : vector<1x352xf32>
    %c0_197 = arith.constant 0 : index
    %c112_198 = arith.constant 112 : index
    %449 = vector.load %arg5[%c0_197, %c112_198] : memref<1x490xf32, #tpu.memory_space<vmem>>, vector<1x352xf32>
    %450 = vector.broadcast %445 : f32 to vector<1x352xf32>
    %451 = arith.mulf %450, %449 : vector<1x352xf32>
    %452 = arith.addf %448, %451 : vector<1x352xf32>
    %453 = arith.addf %443, %452 : vector<1x352xf32>
    %c38 = arith.constant 38 : index
    %454 = memref.load %arg2[%c38] : memref<98xf32, #tpu.memory_space<smem>>
    %c87 = arith.constant 87 : index
    %455 = memref.load %arg2[%c87] : memref<98xf32, #tpu.memory_space<smem>>
    %c0_199 = arith.constant 0 : index
    %c113_200 = arith.constant 113 : index
    %456 = vector.load %arg4[%c0_199, %c113_200] : memref<1x490xf32, #tpu.memory_space<vmem>>, vector<1x352xf32>
    %457 = vector.broadcast %454 : f32 to vector<1x352xf32>
    %458 = arith.mulf %457, %456 : vector<1x352xf32>
    %c0_201 = arith.constant 0 : index
    %c113_202 = arith.constant 113 : index
    %459 = vector.load %arg5[%c0_201, %c113_202] : memref<1x490xf32, #tpu.memory_space<vmem>>, vector<1x352xf32>
    %460 = vector.broadcast %455 : f32 to vector<1x352xf32>
    %461 = arith.mulf %460, %459 : vector<1x352xf32>
    %462 = arith.addf %458, %461 : vector<1x352xf32>
    %463 = arith.addf %453, %462 : vector<1x352xf32>
    %c39 = arith.constant 39 : index
    %464 = memref.load %arg2[%c39] : memref<98xf32, #tpu.memory_space<smem>>
    %c88_203 = arith.constant 88 : index
    %465 = memref.load %arg2[%c88_203] : memref<98xf32, #tpu.memory_space<smem>>
    %c0_204 = arith.constant 0 : index
    %c114 = arith.constant 114 : index
    %466 = vector.load %arg4[%c0_204, %c114] : memref<1x490xf32, #tpu.memory_space<vmem>>, vector<1x352xf32>
    %467 = vector.broadcast %464 : f32 to vector<1x352xf32>
    %468 = arith.mulf %467, %466 : vector<1x352xf32>
    %c0_205 = arith.constant 0 : index
    %c114_206 = arith.constant 114 : index
    %469 = vector.load %arg5[%c0_205, %c114_206] : memref<1x490xf32, #tpu.memory_space<vmem>>, vector<1x352xf32>
    %470 = vector.broadcast %465 : f32 to vector<1x352xf32>
    %471 = arith.mulf %470, %469 : vector<1x352xf32>
    %472 = arith.addf %468, %471 : vector<1x352xf32>
    %473 = arith.addf %463, %472 : vector<1x352xf32>
    %c40 = arith.constant 40 : index
    %474 = memref.load %arg2[%c40] : memref<98xf32, #tpu.memory_space<smem>>
    %c89_207 = arith.constant 89 : index
    %475 = memref.load %arg2[%c89_207] : memref<98xf32, #tpu.memory_space<smem>>
    %c0_208 = arith.constant 0 : index
    %c115 = arith.constant 115 : index
    %476 = vector.load %arg4[%c0_208, %c115] : memref<1x490xf32, #tpu.memory_space<vmem>>, vector<1x352xf32>
    %477 = vector.broadcast %474 : f32 to vector<1x352xf32>
    %478 = arith.mulf %477, %476 : vector<1x352xf32>
    %c0_209 = arith.constant 0 : index
    %c115_210 = arith.constant 115 : index
    %479 = vector.load %arg5[%c0_209, %c115_210] : memref<1x490xf32, #tpu.memory_space<vmem>>, vector<1x352xf32>
    %480 = vector.broadcast %475 : f32 to vector<1x352xf32>
    %481 = arith.mulf %480, %479 : vector<1x352xf32>
    %482 = arith.addf %478, %481 : vector<1x352xf32>
    %483 = arith.addf %473, %482 : vector<1x352xf32>
    %c41 = arith.constant 41 : index
    %484 = memref.load %arg2[%c41] : memref<98xf32, #tpu.memory_space<smem>>
    %c90_211 = arith.constant 90 : index
    %485 = memref.load %arg2[%c90_211] : memref<98xf32, #tpu.memory_space<smem>>
    %c0_212 = arith.constant 0 : index
    %c116 = arith.constant 116 : index
    %486 = vector.load %arg4[%c0_212, %c116] : memref<1x490xf32, #tpu.memory_space<vmem>>, vector<1x352xf32>
    %487 = vector.broadcast %484 : f32 to vector<1x352xf32>
    %488 = arith.mulf %487, %486 : vector<1x352xf32>
    %c0_213 = arith.constant 0 : index
    %c116_214 = arith.constant 116 : index
    %489 = vector.load %arg5[%c0_213, %c116_214] : memref<1x490xf32, #tpu.memory_space<vmem>>, vector<1x352xf32>
    %490 = vector.broadcast %485 : f32 to vector<1x352xf32>
    %491 = arith.mulf %490, %489 : vector<1x352xf32>
    %492 = arith.addf %488, %491 : vector<1x352xf32>
    %493 = arith.addf %483, %492 : vector<1x352xf32>
    %c42 = arith.constant 42 : index
    %494 = memref.load %arg2[%c42] : memref<98xf32, #tpu.memory_space<smem>>
    %c91_215 = arith.constant 91 : index
    %495 = memref.load %arg2[%c91_215] : memref<98xf32, #tpu.memory_space<smem>>
    %c0_216 = arith.constant 0 : index
    %c132 = arith.constant 132 : index
    %496 = vector.load %arg4[%c0_216, %c132] : memref<1x490xf32, #tpu.memory_space<vmem>>, vector<1x352xf32>
    %497 = vector.broadcast %494 : f32 to vector<1x352xf32>
    %498 = arith.mulf %497, %496 : vector<1x352xf32>
    %c0_217 = arith.constant 0 : index
    %c132_218 = arith.constant 132 : index
    %499 = vector.load %arg5[%c0_217, %c132_218] : memref<1x490xf32, #tpu.memory_space<vmem>>, vector<1x352xf32>
    %500 = vector.broadcast %495 : f32 to vector<1x352xf32>
    %501 = arith.mulf %500, %499 : vector<1x352xf32>
    %502 = arith.addf %498, %501 : vector<1x352xf32>
    %503 = arith.addf %493, %502 : vector<1x352xf32>
    %c43 = arith.constant 43 : index
    %504 = memref.load %arg2[%c43] : memref<98xf32, #tpu.memory_space<smem>>
    %c92_219 = arith.constant 92 : index
    %505 = memref.load %arg2[%c92_219] : memref<98xf32, #tpu.memory_space<smem>>
    %c0_220 = arith.constant 0 : index
    %c133 = arith.constant 133 : index
    %506 = vector.load %arg4[%c0_220, %c133] : memref<1x490xf32, #tpu.memory_space<vmem>>, vector<1x352xf32>
    %507 = vector.broadcast %504 : f32 to vector<1x352xf32>
    %508 = arith.mulf %507, %506 : vector<1x352xf32>
    %c0_221 = arith.constant 0 : index
    %c133_222 = arith.constant 133 : index
    %509 = vector.load %arg5[%c0_221, %c133_222] : memref<1x490xf32, #tpu.memory_space<vmem>>, vector<1x352xf32>
    %510 = vector.broadcast %505 : f32 to vector<1x352xf32>
    %511 = arith.mulf %510, %509 : vector<1x352xf32>
    %512 = arith.addf %508, %511 : vector<1x352xf32>
    %513 = arith.addf %503, %512 : vector<1x352xf32>
    %c44_223 = arith.constant 44 : index
    %514 = memref.load %arg2[%c44_223] : memref<98xf32, #tpu.memory_space<smem>>
    %c93_224 = arith.constant 93 : index
    %515 = memref.load %arg2[%c93_224] : memref<98xf32, #tpu.memory_space<smem>>
    %c0_225 = arith.constant 0 : index
    %c134 = arith.constant 134 : index
    %516 = vector.load %arg4[%c0_225, %c134] : memref<1x490xf32, #tpu.memory_space<vmem>>, vector<1x352xf32>
    %517 = vector.broadcast %514 : f32 to vector<1x352xf32>
    %518 = arith.mulf %517, %516 : vector<1x352xf32>
    %c0_226 = arith.constant 0 : index
    %c134_227 = arith.constant 134 : index
    %519 = vector.load %arg5[%c0_226, %c134_227] : memref<1x490xf32, #tpu.memory_space<vmem>>, vector<1x352xf32>
    %520 = vector.broadcast %515 : f32 to vector<1x352xf32>
    %521 = arith.mulf %520, %519 : vector<1x352xf32>
    %522 = arith.addf %518, %521 : vector<1x352xf32>
    %523 = arith.addf %513, %522 : vector<1x352xf32>
    %c45_228 = arith.constant 45 : index
    %524 = memref.load %arg2[%c45_228] : memref<98xf32, #tpu.memory_space<smem>>
    %c94_229 = arith.constant 94 : index
    %525 = memref.load %arg2[%c94_229] : memref<98xf32, #tpu.memory_space<smem>>
    %c0_230 = arith.constant 0 : index
    %c135_231 = arith.constant 135 : index
    %526 = vector.load %arg4[%c0_230, %c135_231] : memref<1x490xf32, #tpu.memory_space<vmem>>, vector<1x352xf32>
    %527 = vector.broadcast %524 : f32 to vector<1x352xf32>
    %528 = arith.mulf %527, %526 : vector<1x352xf32>
    %c0_232 = arith.constant 0 : index
    %c135_233 = arith.constant 135 : index
    %529 = vector.load %arg5[%c0_232, %c135_233] : memref<1x490xf32, #tpu.memory_space<vmem>>, vector<1x352xf32>
    %530 = vector.broadcast %525 : f32 to vector<1x352xf32>
    %531 = arith.mulf %530, %529 : vector<1x352xf32>
    %532 = arith.addf %528, %531 : vector<1x352xf32>
    %533 = arith.addf %523, %532 : vector<1x352xf32>
    %c46_234 = arith.constant 46 : index
    %534 = memref.load %arg2[%c46_234] : memref<98xf32, #tpu.memory_space<smem>>
    %c95 = arith.constant 95 : index
    %535 = memref.load %arg2[%c95] : memref<98xf32, #tpu.memory_space<smem>>
    %c0_235 = arith.constant 0 : index
    %c136 = arith.constant 136 : index
    %536 = vector.load %arg4[%c0_235, %c136] : memref<1x490xf32, #tpu.memory_space<vmem>>, vector<1x352xf32>
    %537 = vector.broadcast %534 : f32 to vector<1x352xf32>
    %538 = arith.mulf %537, %536 : vector<1x352xf32>
    %c0_236 = arith.constant 0 : index
    %c136_237 = arith.constant 136 : index
    %539 = vector.load %arg5[%c0_236, %c136_237] : memref<1x490xf32, #tpu.memory_space<vmem>>, vector<1x352xf32>
    %540 = vector.broadcast %535 : f32 to vector<1x352xf32>
    %541 = arith.mulf %540, %539 : vector<1x352xf32>
    %542 = arith.addf %538, %541 : vector<1x352xf32>
    %543 = arith.addf %533, %542 : vector<1x352xf32>
    %c47_238 = arith.constant 47 : index
    %544 = memref.load %arg2[%c47_238] : memref<98xf32, #tpu.memory_space<smem>>
    %c96 = arith.constant 96 : index
    %545 = memref.load %arg2[%c96] : memref<98xf32, #tpu.memory_space<smem>>
    %c0_239 = arith.constant 0 : index
    %c137 = arith.constant 137 : index
    %546 = vector.load %arg4[%c0_239, %c137] : memref<1x490xf32, #tpu.memory_space<vmem>>, vector<1x352xf32>
    %547 = vector.broadcast %544 : f32 to vector<1x352xf32>
    %548 = arith.mulf %547, %546 : vector<1x352xf32>
    %c0_240 = arith.constant 0 : index
    %c137_241 = arith.constant 137 : index
    %549 = vector.load %arg5[%c0_240, %c137_241] : memref<1x490xf32, #tpu.memory_space<vmem>>, vector<1x352xf32>
    %550 = vector.broadcast %545 : f32 to vector<1x352xf32>
    %551 = arith.mulf %550, %549 : vector<1x352xf32>
    %552 = arith.addf %548, %551 : vector<1x352xf32>
    %553 = arith.addf %543, %552 : vector<1x352xf32>
    %c48_242 = arith.constant 48 : index
    %554 = memref.load %arg2[%c48_242] : memref<98xf32, #tpu.memory_space<smem>>
    %c97 = arith.constant 97 : index
    %555 = memref.load %arg2[%c97] : memref<98xf32, #tpu.memory_space<smem>>
    %c0_243 = arith.constant 0 : index
    %c138 = arith.constant 138 : index
    %556 = vector.load %arg4[%c0_243, %c138] : memref<1x490xf32, #tpu.memory_space<vmem>>, vector<1x352xf32>
    %557 = vector.broadcast %554 : f32 to vector<1x352xf32>
    %558 = arith.mulf %557, %556 : vector<1x352xf32>
    %c0_244 = arith.constant 0 : index
    %c138_245 = arith.constant 138 : index
    %559 = vector.load %arg5[%c0_244, %c138_245] : memref<1x490xf32, #tpu.memory_space<vmem>>, vector<1x352xf32>
    %560 = vector.broadcast %555 : f32 to vector<1x352xf32>
    %561 = arith.mulf %560, %559 : vector<1x352xf32>
    %562 = arith.addf %558, %561 : vector<1x352xf32>
    %563 = arith.addf %553, %562 : vector<1x352xf32>
    %564 = arith.negf %563 : vector<1x352xf32>
    %565 = math.exp %564 : vector<1x352xf32>
    %cst_246 = arith.constant 1.000000e+00 : f32
    %566 = vector.broadcast %cst_246 : f32 to vector<1x352xf32>
    %567 = arith.addf %566, %565 : vector<1x352xf32>
    %568 = arith.divf %566, %567 : vector<1x352xf32>
    %569 = vector.shape_cast %568 : vector<1x352xf32> to vector<1x1x352xf32>
    %c0_247 = arith.constant 0 : index
    %c0_248 = arith.constant 0 : index
    %c0_249 = arith.constant 0 : index
    %570 = vector.load %arg3[%c0_247, %c0_248, %c0_249] : memref<1x1x352xf32, #tpu.memory_space<vmem>>, vector<1x1x352xf32>
    tpu.vector_store %arg3[%c0_247, %c0_248, %c0_249], %569 {strides = array<i32>} : memref<1x1x352xf32, #tpu.memory_space<vmem>>, vector<1x1x352xf32>,
    return
  }
  func.func @transform_0(%arg0: i32) -> (i32, i32, i32) {
    %c0_i32 = arith.constant 0 : i32
    %c0_i32_0 = arith.constant 0 : i32
    %c0_i32_1 = arith.constant 0 : i32
    return %arg0, %c0_i32, %c0_i32_0 : i32, i32, i32
  }
  func.func @transform_1(%arg0: i32) -> i32 {
    %c0_i32 = arith.constant 0 : i32
    %c0_i32_0 = arith.constant 0 : i32
    return %c0_i32 : i32
  }
  func.func @transform_2(%arg0: i32) -> (i32, i32, i32) {
    %c0_i32 = arith.constant 0 : i32
    %c0_i32_0 = arith.constant 0 : i32
    %c0_i32_1 = arith.constant 0 : i32
    return %arg0, %c0_i32, %c0_i32_0 : i32, i32, i32
  }
}

</mosaic_0001>

<bundles_post_ra>
// kernel: tpu_custom_call.1
= control target key start
LH: loop header
LB: loop body
LE: loop exit
PB: predicated region body
PF: predicated region fallthrough
CT: control target
= control target key end

     0   :  { %7 = vsyncpa [#allocation5], 0  ;;  %s2604_s0 = inlined_call_operand.hbm [shape: f32[2,4,256], index: 0, kind: input, shape index: {}]   ;;  %s2605_s1 = inlined_call_operand.vmem [shape: f32[98], index: 1, kind: input, shape index: {}]   ;;  %s2606_s2 = inlined_call_operand.hbm [shape: f32[2,1,352], index: 2, kind: output, shape index: {}]  }
   0x1   :  { %9 = vsyncpa [#allocation5 + $0x1], 0 }
   0x2   :  { %10 = vsyncpa [#allocation7], 0 }
   0x3   :  { %11 = vsyncpa [#allocation6], 0 }
   0x4   :  { %13 = vsyncpa [#allocation6 + $0x1], 0  ;;  %s1731_s9 = smov 0   ;;  %s1733_s10 = smov 0  }
   0x5   :  { %s1735_s11 = smov 0   ;;  %s1737_s12 = smov 0  }
   0x6 LB: > { %s1752_s13 = sadd.s32 4294967295, %s1652_s12   ;;  %s1302_s14 = sadd.s32 4294967294, %s1652_s12   ;;  %s1652_s12 = sphi %s1737_s12, %s2697_s12   ;;  %s1648_s11 = sphi %s1735_s11, %s2696_s11   ;;  %s1644_s10 = sphi %s1733_s10, %s2695_s10   ;;  %s1640_s9 = sphi %s1731_s9, %s2694_s9  }
   0x7   : > { %p39_p0 = scmp.ne.s32.totalorder %s1644_s10, %s1640_s9  ;;  %p2607_p1 = scmp.eq.s32.totalorder %s1752_s13, 0 }
   0x8   : > { %p90_p3 = scmp.eq.s32.totalorder %s1302_s14, 1  ;;  %p1303_p5 = scmp.ge.s32.totalorder %s1652_s12, 1 }
   0x9   : > { %p1761_p4 = por %p2607_p1, %p39_p0  ;;  %p97_p7 = scmp.lt.s32.totalorder %s1652_s12, 3 }
   0xa   : > { %p1766_p6 = por %p90_p3, %p39_p0  ;;  %s110_s19 = sshll.u32 %s2605_s1, 4  ;;  %s111_s19 = int_to_ptr.vmem [resolvable:$true] %s110_s19 }
   0xb   : > { %s2619_s15 = scalar_select %p1761_p4, 1, 0 }
   0xc   : > { %s2620_s16 = scalar_select %p1766_p6, 1, 0 }
   0xd   : > { %p1774_p8 = pnand %p1303_p5, %p97_p7  ;;  %s1782_s21 = sadd.s32 1, %s1652_s12  }
   0xe   : > { %s23_s23 = ssub.s32 %s1652_s12, %s1782_s21  ;;  %s26_s25 = sadd.s32 1, %s1648_s11 }
   0xf   : > { %p1424_p10 = pneg %p1774_p8  ;;  %p1792_p12 = scmp.eq.s32.totalorder %s23_s23, 0 }
  0x10   : > { %p33_p13 = scmp.ne.s32.totalorder %s1648_s11, %s1644_s10  ;;  %s1537_s26 = scalar_lea.vmem %s111_s19, 16 }
  0x11   : > { %p1786_p11 = pnand %p1424_p10, %p2607_p1  ;;  %p1538_p0 = scmp.ne.s32.totalorder %s111_s19, %s1537_s26 }
  0x12   : > { %p1545_p9 = scmp.lt.s32.totalorder %s111_s19, %s111_s19  ;;  %p1546_p2 = scmp.lt.s32.totalorder %s1537_s26, %s1537_s26 }
  0x13   : > { %p1539_p3 = pneg %p1786_p11 }
  0x14   : > { %p1547_p10 = por %p1546_p2, %p1545_p9 }
  0x15   : > { %p1540_p5 = pnand %p1539_p3, %p1538_p0 }
  0x17   : > { %p1541_p7 = pneg %p1540_p5 }
  0x19   : > { %p1548_p1 = pnand %p1547_p10, %p1541_p7 }
  0x1b   : > { %1551 = shalt.err (!%p1548_p1)
}
  0x1c   : > { %s1654_s27 = smov [#allocation8]   ;;  %p34_p2 = scmp.eq.s32.totalorder %s1652_s12, 0 }
  0x1d   : > { %1427 = dma.vmem_to_smem (!%p1786_p11), %s111_s19, 16, %s1654_s27, [#allocation7]  }
  0x1e   : > { %s1806_s28 = scalar_select %p1792_p12, %s1648_s11, %s26_s25  }
  0x1f   : > { %p2624_p1 = scmp.eq.s32.totalorder %s1752_s13, 1  ;;  %p1437_p0 = scmp.lt.s32.totalorder %s1652_s12, 2 }
  0x20   : > { %s121_s30 = sand.u32 1, %s1648_s11   ;;  %p35_p3 = por %p34_p2, %p33_p13 }
  0x21   : > { %p1814_p9 = por %p2624_p1, %p33_p13  ;;  %s1306_s3 = sshll.u32 %s121_s30, 3 }
  0x22   : > { %s1413_s4 = sshll.u32 %s1652_s12, 7  ;;  %s125_s8 = scalar_lea.vmem [#allocation4], %s1306_s3 }
  0x23   : > { %s2625_s29 = scalar_select %p1814_p9, 1, 0 }
  0x24   : > { %s1827_s7 = scalar_lea.hbm %s2604_s0, %s1413_s4  ;;  %s133_s14 = sshll.u32 %s125_s8, 4  ;;  %s1833_s14 = int_to_ptr.vmem [resolvable:$true] %s133_s14 }
  0x25   : > { %p1829_p11 = pnand %p1437_p0, %p35_p3  ;;  %s122_s18 = scalar_lea.sflag [#allocation5], %s121_s30 }
  0x26   : > { %s1552_s19 = scalar_lea.hbm %s1827_s7, 128  ;;  %s1557_s24 = scalar_lea.hbm %s2604_s0, 256 }
  0x27   : > { %p1553_p12 = scmp.ne.s32.totalorder %s1827_s7, %s1552_s19  ;;  %p1554_p13 = pneg %p1829_p11 }
  0x28   : > { %p1558_p10 = scmp.lt.u32.totalorder %s1827_s7, %s2604_s0  ;;  %p1559_p2 = scmp.lt.u32.totalorder %s1557_s24, %s1552_s19 }
  0x29   : > { %p1555_p5 = pnand %p1554_p13, %p1553_p12  ;;  %p1561_p0 = scmp.lt.u32.totalorder %s1552_s19, %s1827_s7 }
  0x2a   : > { %p1560_p1 = por %p1559_p2, %p1558_p10 }
  0x2b   : > { %p1556_p7 = pneg %p1555_p5 }
  0x2c   : > { %p1562_p3 = por %p1561_p0, %p1560_p1 }
  0x2e   : > { %p1563_p6 = pnand %p1562_p3, %p1556_p7 }
  0x30   : > { %1566 = shalt.err (!%p1563_p6)
}
  0x31   : > { %s1567_s27 = scalar_lea.vmem %s1833_s14, 128  ;;  %s1655_s30 = smov [#allocation4]  }
  0x32   : > { %p1568_p12 = scmp.ne.s32.totalorder %s1833_s14, %s1567_s27  ;;  %s1572_s3 = sshll.u32 %s1655_s30, 4  ;;  %s1573_s3 = int_to_ptr.vmem [resolvable:$false] %s1572_s3 }
  0x33   : > { %s1574_s4 = scalar_lea.vmem %s1573_s3, 256  ;;  %p1575_p4 = scmp.lt.s32.totalorder %s1833_s14, %s1573_s3 }
  0x34   : > { %p1570_p5 = pnand %p1568_p12, %p1554_p13  ;;  %p1576_p10 = scmp.lt.s32.totalorder %s1574_s4, %s1567_s27 }
  0x36   : > { %p1571_p9 = pneg %p1570_p5  ;;  %p1577_p2 = por %p1576_p10, %p1575_p4 }
  0x38   : > { %p1578_p1 = pnand %p1577_p2, %p1571_p9 }
  0x3a   : > { %1581 = shalt.err (!%p1578_p1)
}
  0x3b   : > { %1431 = dma.hbm_to_vmem [thread:$0]  (!%p1829_p11), %s1827_s7, 128, %s1833_s14, %s122_s18  }
  0x3c   : > { %142 = sbr.rel (%p1774_p8) target bundleno = 530 (0x212), region = 28  ;;  %s1863_s5 = sand.u32 (!%p1774_p8), 1, %s1644_s10  }
  0x3d   : > { %s1310_s6 = sshll.u32 (!%p1774_p8), %s1863_s5, 3  ;;  %s145_s8 = scalar_lea.sflag (!%p1774_p8), [#allocation5], %s1863_s5 }
  0x3e   : > { %s148_s19 = scalar_lea.vmem (!%p1774_p8), [#allocation4], %s1310_s6  ;;  %p2627_p4 = scmp.ne.s32.totalorder (!%p1774_p8), %s2619_s15, 0 }
  0x43   : > { %1627 = dma.done.wait (%p2627_p4), %s145_s8, 128  }
  0x44   : > { %1629 = vsyncadd (%p2627_p4), %s145_s8, 4294967168  ;;  %p2628_p6 = scmp.eq.s32.totalorder %s1752_s13, 0 }
  0x46   : > { %1631 = dma.done.wait (%p2628_p6), [#allocation7], 16   ;;  %p2629_p9 = pmov %p2628_p6 }
  0x48   : > { %1633 = vsyncadd (%p2629_p9), [#allocation7], 4294967280 }
  0x49   : > { %157 = sfence }
  0x4a   : > { %v174_v0 = vld [vmem:[%s148_s19] sm:$0xff]  ;;  %vm178_vm0 = vcmask 1043456   ;;  %v209_v1 = vlaneseq  ;;  %v1656_v3 = vmov 1966171168   ;;  %v1657_v12 = vmov 0.0   ;;  %s1658_s15 = smov 69  }
  0x4b   : > { %v193_v2 = vsel %vm178_vm0, %v174_v0, -inf  ;;  %v217_v4 = vunpack.c.l.s4 %v1656_v3  ;;  %v179_v5 = vsel %vm178_vm0, %v174_v0, 0.0  ;;  %v176_v6 = vcombine.high %v174_v0, %v174_v0  ;;  %s1659_s20 = smov 81   ;;  %s1660_s7 = smov 75  }
  0x4c   : > { %v194_v7 = vrot.slane %v193_v2, 4  ;;  %v180_v8 = vrot.slane %v179_v5, 4  ;;  %vm211_vm1 = vcmp.lt.s32.totalorder %v209_v1, 490  ;;  %v220_v14 = vshrl.u32 %v209_v1, 7  ;;  %s1661_s14 = smov 87   ;;  %s1662_s17 = smov 93  }
  0x4d   : > { %v186_v9 = vsel %vm178_vm0, %v176_v6, 0.0  ;;  %214 = vst.msk [vmem:[#allocation3] sm:$0xf] %vm211_vm1, %v1657_v12  ;;  %213 = vst.msk [vmem:[#allocation2] sm:$0xf] %vm211_vm1, %v1657_v12  ;;  %v218_v13 = vunpack.c.0.s8 %v217_v4  ;;  %v200_v17 = vsel %vm178_vm0, %v176_v6, -inf }
  0x4e   : > { %v195_v10 = vmax.f32 %v193_v2, %v194_v7  ;;  %v181_v11 = vadd.f32 %v180_v8, %v179_v5  ;;  %v187_v18 = vrot.slane %v186_v9, 4  ;;  %v201_v21 = vrot.slane %v200_v17, 4  ;;  %s1663_s18 = smov 99   ;;  %s1664_s22 = smov 117  }
  0x4f   : > { %v221_v23 = vsub.s32 %v218_v13, %v220_v14  ;;  %s1665_s23 = smov 105   ;;  %s1666_s24 = smov 111   ;;  %vm1890_vm2 = vcmp.ge.s32.totalorder %v209_v1, 69  ;;  %vm1895_vm3 = vcmp.lt.s32.totalorder %v209_v1, 85  ;;  %vm1904_vm5 = vcmp.ge.s32.totalorder %v209_v1, 91 }
  0x50   : > { %v196_v15 = vrot.slane %v195_v10, 2  ;;  %v182_v16 = vrot.slane %v181_v11, 2  ;;  %v188_v25 = vadd.f32 %v187_v18, %v186_v9  ;;  %v202_v30 = vmax.f32 %v200_v17, %v201_v21  ;;  %s2618_s25 = smov 123   ;;  %s1668_s26 = smov 1   ;;  %vm235_vm4 = vmand %vm1890_vm2, %vm1895_vm3 }
  0x51   : > { %s1669_s27 = smov 7   ;;  %s1670_s30 = smov 25   ;;  %vm1909_vm6 = vcmp.lt.s32.totalorder %v209_v1, 107  ;;  %vm1914_vm7 = vcmp.ge.s32.totalorder %v209_v1, 113  ;;  %vm1919_vm8 = vcmp.lt.s32.totalorder %v209_v1, 129  ;;  %vm270_vm9 = vcmask 662528  }
  0x52   : > { %v197_v19 = vmax.f32 %v195_v10, %v196_v15  ;;  %v183_v20 = vadd.f32 %v182_v16, %v181_v11  ;;  %v189_v31 = vrot.slane %v188_v25, 2  ;;  %v203_v35 = vrot.slane %v202_v30, 2  ;;  %s2616_s3 = smov 13   ;;  %s1672_s4 = smov 19   ;;  %vm2611_vm10 = vmand %vm1904_vm5, %vm1909_vm6 }
  0x53   : > { %s1673_s6 = smov 31   ;;  %vm2610_vm11 = vmand %vm1914_vm7, %vm1919_vm8  ;;  %vm1937_vm12 = vcmp.ge.s32.totalorder %v209_v1, 7  ;;  %vm1942_vm13 = vcmp.lt.s32.totalorder %v209_v1, 23  ;;  %vm1962_vm15 = vcmp.ge.s32.totalorder %v209_v1, 29  ;;  %vm1967_vm0 = vcmp.lt.s32.totalorder %v209_v1, 45  ;;  %s2121_s8 = sld [smem:[#allocation8 + $0x2]] }
  0x54   : > { %v198_v22 = vrot.slane %v197_v19, 1  ;;  %v184_v24 = vrot.slane %v183_v20, 1  ;;  %v190_v36 = vadd.f32 %v189_v31, %v188_v25  ;;  %v204_v37 = vmax.f32 %v202_v30, %v203_v35  ;;  %vm2612_vm14 = vmand %vm1937_vm12, %vm1942_vm13  ;;  %s2123_s19 = sld [smem:[#allocation8 + $0x33]]  ;;  %p2691_p11 = scmp.ne.s32.totalorder %s2625_s29, 0 }
  0x55   : > { %vm2613_vm1 = vmand %vm1962_vm15, %vm1967_vm0  ;;  %v2652_v3 = vmov 0  ;;  %vm2026_vm2 = vcmp.lt.s32.totalorder %v209_v1, 89 }
  0x56   : > { %v199_v26 = vmax.f32 %v197_v19, %v198_v22  ;;  %v185_v27 = vadd.f32 %v184_v24, %v183_v20  ;;  %v191_v38 = vrot.slane %v190_v36, 1  ;;  %v205_v39 = vrot.slane %v204_v37, 1  ;;  %vm2660_vm3 = vmand %vm1937_vm12, %vm1942_vm13 }
  0x57   : > { %vm2055_vm12 = vcmp.lt.s32.totalorder %v209_v1, 111  ;;  %vm2065_vm13 = vcmp.lt.s32.totalorder %v209_v1, 133 }
  0x58   : > { %v244_v28 = vrot.slane %v199_v26, %v221_v23  ;;  %v207_v29 = vmul.f32 0.25, %v185_v27  ;;  %v192_v40 = vadd.f32 %v191_v38, %v190_v36  ;;  %v206_v41 = vmax.f32 %v204_v37, %v205_v39 }
  0x59   : > { %v493_v54 = vstv %s2121_s8  ;;  %s2191_s8 = sld [smem:[#allocation8 + $0x38]] }
  0x5a   : > { %v251_v32 = vrot.slane %v244_v28, %v221_v23  ;;  %v222_v33 = vrot.slane %v207_v29, %v221_v23  ;;  %v208_v42 = vmul.f32 0.25, %v192_v40  ;;  %v370_v43 = vrot.slane %v206_v41, %v221_v23 }
  0x5c   : > { %252 = vrot.lane.b32.xlu1 %v251_v32, %s1658_s15  ;;  %277 = vrot.lane.b32.xlu0 %v251_v32, %s1659_s20  ;;  %v229_v34 = vrot.slane %v222_v33, %v221_v23  ;;  %v345_v44 = vrot.slane %v208_v42, %v221_v23  ;;  %v377_v45 = vrot.slane %v370_v43, %v221_v23 }
  0x5e   : > { %v352_v46 = vrot.slane %v345_v44, %v221_v23 }
  0x5f   : > { %v570_v24 = vstv %s2191_s8  ;;  %s2242_s8 = sld [smem:[#allocation8 + $0xe]] }
  0x60   : > { %263 = vrot.lane.b32.xlu1 %v251_v32, %s1660_s7  ;;  %267 = vrot.lane.b32.xlu0 %v229_v34, %s1659_s20 }
  0x64   : > { %290 = vrot.lane.b32.xlu1 %v251_v32, %s1661_s14  ;;  %256 = vrot.lane.b32.xlu0 %v229_v34, %s1660_s7  ;;  %s2141_s7 = sld [smem:[#allocation8 + $0x32]] }
  0x68   : > { %301 = vrot.lane.b32.xlu1 %v251_v32, %s1662_s17  ;;  %283 = vrot.lane.b32.xlu0 %v229_v34, %s1661_s14  ;;  %s2143_s14 = sld [smem:[#allocation8 + $0x4]] }
  0x6a   : > { %v480_v57 = vstv %s2141_s7  ;;  %s2209_s7 = sld [smem:[#allocation8 + $0x9]] }
  0x6c   : > { %312 = vrot.lane.b32.xlu1 %v251_v32, %s1663_s18  ;;  %294 = vrot.lane.b32.xlu0 %v229_v34, %s1662_s17  ;;  %s2145_s17 = sld [smem:[#allocation8 + $0x35]] }
  0x70   : > { %230 = vrot.lane.b32.xlu1 %v229_v34, %s1658_s15  ;;  %305 = vrot.lane.b32.xlu0 %v229_v34, %s1663_s18  ;;  %s2139_s15 = sld [smem:[#allocation8 + $0x1]]  ;;  %s2147_s18 = sld [smem:[#allocation8 + $0x3]] }
  0x74   : > { %378 = vrot.lane.b32.xlu1 %v377_v45, %s1664_s22  ;;  %353 = vrot.lane.b32.xlu0 %v352_v46, %s1664_s22  ;;  %s2149_s22 = sld [smem:[#allocation8 + $0x34]] }
  0x76   : > { %v478_v56 = vstv %s2139_s15  ;;  %v508_v62 = vstv %s2147_s18  ;;  %s2205_s15 = sld [smem:[#allocation8 + $0x3b]]  ;;  %s1675_s18 = smov 127  }
  0x78   : > { %323 = vrot.lane.b32.xlu1 %v251_v32, %s1665_s23  ;;  %316 = vrot.lane.b32.xlu0 %v229_v34, %s1665_s23 }
  0x7c   : > { %334 = vrot.lane.b32.xlu1 %v251_v32, %s1666_s24  ;;  %327 = vrot.lane.b32.xlu0 %v229_v34, %s1666_s24  ;;  %s2165_s24 = sld [smem:[#allocation8 + $0x6]] }
  0x80   : > { %391 = vrot.lane.b32.xlu1 %v377_v45, %s2618_s25  ;;  %384 = vrot.lane.b32.xlu0 %v352_v46, %s2618_s25 }
  0x84   : > { %402 = vrot.lane.b32.xlu1 %v377_v45, %s1668_s26  ;;  %395 = vrot.lane.b32.xlu0 %v352_v46, %s1668_s26  ;;  %s2167_s26 = sld [smem:[#allocation8 + $0x37]] }
  0x88   : > { %413 = vrot.lane.b32.xlu1 %v377_v45, %s1669_s27  ;;  %406 = vrot.lane.b32.xlu0 %v352_v46, %s1669_s27  ;;  %s2169_s27 = sld [smem:[#allocation8 + $0x5]] }
  0x8c   : > { %449 = vrot.lane.b32.xlu1 %v377_v45, %s1670_s30  ;;  %439 = vrot.lane.b32.xlu0 %v352_v46, %s1670_s30  ;;  %s2171_s30 = sld [smem:[#allocation8 + $0x36]] }
  0x8e   : > { %v538_v13 = vstv %s2169_s27  ;;  %s2227_s27 = sld [smem:[#allocation8 + $0x3c]] }
  0x90   : > { %424 = vrot.lane.b32.xlu1 %v377_v45, %s2616_s3  ;;  %417 = vrot.lane.b32.xlu0 %v352_v46, %s2616_s3  ;;  %s2183_s3 = sld [smem:[#allocation8 + $0x7]] }
  0x94   : > { %435 = vrot.lane.b32.xlu1 %v377_v45, %s1672_s4  ;;  %428 = vrot.lane.b32.xlu0 %v352_v46, %s1672_s4  ;;  %s2177_s4 = sld [smem:[#allocation8 + $0x8]] }
  0x98   : > { %462 = vrot.lane.b32.xlu1 %v377_v45, %s1673_s6  ;;  %455 = vrot.lane.b32.xlu0 %v352_v46, %s1673_s6  ;;  %s2179_s6 = sld [smem:[#allocation8 + $0x39]] }
  0x9a   : > { %v583_v17 = vstv %s2177_s4  ;;  %s1677_s4 = smov 125  }
  0xce   : > { %v253_v51 = vpop.permute.xlu1 %252  ;;  %v278_v52 = vpop.permute.xlu0 %277 }
  0xcf   : > { %255 = vst.msk [vmem:[#allocation3] sm:$0x1] %vm235_vm4, %v253_v51  ;;  %v279_v55 = vrot.slane %v278_v52, 7 }
  0xd1   : > { %v280_v60 = vsel %vm270_vm9, %v279_v55, %v278_v52  ;;  %v495_v55 = vstv %s2123_s19  ;;  %s2197_s19 = sld [smem:[#allocation8 + $0xa]] }
  0xd2   : > { %v264_v58 = vpop.permute.xlu1 %263  ;;  %v268_v59 = vpop.permute.xlu0 %267 }
  0xd3   : > { %266 = vst.msk [vmem:[#allocation3] sm:$0x1] %vm2611_vm10, %v264_v58  ;;  %vm1986_vm10 = vcmp.lt.s32.totalorder %v209_v1, 67  ;;  %v269_v8 = vrot.slane %v268_v59, 7  ;;  %v523_v58 = vstv %s2143_s14  ;;  %s2211_s14 = sld [smem:[#allocation8 + $0x3a]] }
  0xd4   : > { %282 = vst.msk [vmem:[#allocation3] sm:$0x3] %vm2610_vm11, %v280_v60  ;;  %vm1981_vm11 = vcmp.ge.s32.totalorder %v209_v1, 51  ;;  %v2653_v3 = vsel %vm1986_vm10, 4294967295, %v2652_v3 }
  0xd5   : > { %v271_v11 = vsel %vm270_vm9, %v269_v8, %v268_v59  ;;  %v525_v59 = vstv %s2145_s17  ;;  %v555_v8 = vstv %s2167_s26  ;;  %s1674_s17 = smov 126   ;;  %s2225_s26 = sld [smem:[#allocation8 + $0xb]] }
  0xd6   : > { %v291_v63 = vpop.permute.xlu1 %290  ;;  %v257_v0 = vpop.permute.xlu0 %256 }
  0xd7   : > { %293 = vst.msk [vmem:[#allocation3 + $0x1] sm:$0x1] %vm2612_vm14, %v291_v63  ;;  %vm2614_vm14 = vmand %vm1981_vm11, %vm1986_vm10  ;;  %vm2021_vm10 = vcmp.ge.s32.totalorder %v209_v1, 73  ;;  %v510_v63 = vstv %s2149_s22  ;;  %s2213_s22 = sld [smem:[#allocation8 + $0xc]] }
  0xda   : > { %v302_v4 = vpop.permute.xlu1 %301  ;;  %v284_v5 = vpop.permute.xlu0 %283 }
  0xdb   : > { %304 = vst.msk [vmem:[#allocation3 + $0x1] sm:$0x1] %vm2613_vm1, %v302_v4  ;;  %vm2654_vm1 = vmand %vm1904_vm5, %vm1909_vm6  ;;  %vm2662_vm5 = vnez %v2653_v3  ;;  %v628_v43 = vstv %s2225_s26  ;;  %s2283_s26 = sld [smem:[#allocation8 + $0x43]] }
  0xdc   : > { %vm2663_vm6 = vmand %vm1981_vm11, %vm2662_vm5  ;;  %vm2060_vm11 = vcmp.ge.s32.totalorder %v209_v1, 117 }
  0xde   : > { %v313_v6 = vpop.permute.xlu1 %312  ;;  %v295_v7 = vpop.permute.xlu0 %294 }
  0xdf   : > { %315 = vst.msk [vmem:[#allocation3 + $0x1] sm:$0x1] %vm2614_vm14, %v313_v6  ;;  %vm2655_vm14 = vmand %vm1914_vm7, %vm1919_vm8  ;;  %vm2050_vm8 = vcmp.ge.s32.totalorder %v209_v1, 95 }
  0xe0   : > { %vm321_vm7 = vmand %vm2021_vm10, %vm2026_vm2  ;;  %vm356_vm10 = vcmask 957440  }
  0xe2   : > { %v231_v9 = vpop.permute.xlu1 %230  ;;  %v306_v10 = vpop.permute.xlu0 %305 }
  0xe3   : > { %236 = vst.msk [vmem:[#allocation2] sm:$0x1] %vm235_vm4, %v231_v9  ;;  %vm2661_vm4 = vmand %vm1962_vm15, %vm1967_vm0  ;;  %vm2078_vm0 = vcmp.ge.s32.totalorder %v209_v1, 11 }
  0xe4   : > { %262 = vst.msk [vmem:[#allocation2] sm:$0x1] %vm2654_vm1, %v257_v0  ;;  %vm361_vm15 = vmand %vm2060_vm11, %vm2065_vm13  ;;  %vm2083_vm1 = vcmp.lt.s32.totalorder %v209_v1, 27  ;;  %vm421_vm11 = vcmp.lt.s32.totalorder %v209_v1, 93 }
  0xe5   : > { %276 = vst.msk [vmem:[#allocation2] sm:$0x3] %vm2655_vm14, %v271_v11  ;;  %vm332_vm14 = vmand %vm2050_vm8, %vm2055_vm12  ;;  %vm420_vm12 = vcmp.ge.s32.totalorder %v209_v1, 77 }
  0xe6   : > { %289 = vst.msk [vmem:[#allocation2 + $0x1] sm:$0x1] %vm2660_vm3, %v284_v5  ;;  %v379_v14 = vpop.permute.xlu1 %378  ;;  %v354_v15 = vpop.permute.xlu0 %353  ;;  %vm389_vm2 = vmand %vm2078_vm0, %vm2083_vm1  ;;  %vm398_vm3 = vcmp.ge.s32.totalorder %v209_v1, 33  ;;  %vm2113_vm0 = vcmp.lt.s32.totalorder %v209_v1, 137  ;;  %vm442_vm1 = vcmask 203776  }
  0xe7   : > { %300 = vst.msk [vmem:[#allocation2 + $0x1] sm:$0x1] %vm2661_vm4, %v295_v7  ;;  %v380_v22 = vrot.slane %v379_v14, 7  ;;  %v355_v23 = vrot.slane %v354_v15, 7  ;;  %vm399_vm4 = vcmp.lt.s32.totalorder %v209_v1, 49  ;;  %vm422_vm13 = vmand %vm420_vm12, %vm421_vm11  ;;  %v553_v7 = vstv %s2165_s24  ;;  %s2219_s24 = sld [smem:[#allocation8 + $0x3d]] }
  0xe8   : > { %311 = vst.msk [vmem:[#allocation2 + $0x1] sm:$0x1] %vm2663_vm6, %v306_v10  ;;  %vm400_vm5 = vmand %vm398_vm3, %vm399_vm4  ;;  %vm409_vm6 = vcmp.ge.s32.totalorder %v209_v1, 55  ;;  %vm2130_vm4 = vcmp.ge.s32.totalorder %v209_v1, 15  ;;  %vm517_vm12 = vcmask 1022976   ;;  %vm532_vm11 = vcmask 1014784  }
  0xe9   : > { %v381_v28 = vsel %vm356_vm10, %v380_v22, %v379_v14  ;;  %v357_v29 = vsel %vm356_vm10, %v355_v23, %v354_v15  ;;  %vm2098_vm10 = vcmp.ge.s32.totalorder %v209_v1, 99  ;;  %v540_v14 = vstv %s2171_s30  ;;  %s1676_s30 = smov 124  }
  0xea   : > { %v324_v18 = vpop.permute.xlu1 %323  ;;  %v317_v19 = vpop.permute.xlu0 %316  ;;  %v568_v23 = vstv %s2183_s3  ;;  %s2237_s3 = sld [smem:[#allocation8 + $0x3e]] }
  0xeb   : > { %326 = vst.msk [vmem:[#allocation3 + $0x1] sm:$0x1] %vm321_vm7, %v324_v18  ;;  %322 = vst.msk [vmem:[#allocation2 + $0x1] sm:$0x1] %vm321_vm7, %v317_v19  ;;  %vm410_vm7 = vcmp.lt.s32.totalorder %v209_v1, 71  ;;  %v585_v18 = vstv %s2179_s6  ;;  %s2233_s6 = sld [smem:[#allocation8 + $0xd]] }
  0xec   : > { %vm411_vm8 = vmand %vm409_vm6, %vm410_vm7  ;;  %vm487_vm7 = vcmask 1039360  }
  0xed   : > { %v645_v38 = vstv %s2219_s24  ;;  %s2265_s24 = sld [smem:[#allocation8 + $0x11]] }
  0xee   : > { %v335_v26 = vpop.permute.xlu1 %334  ;;  %v328_v27 = vpop.permute.xlu0 %327 }
  0xef   : > { %337 = vst.msk [vmem:[#allocation3 + $0x1] sm:$0x1] %vm332_vm14, %v335_v26  ;;  %333 = vst.msk [vmem:[#allocation2 + $0x1] sm:$0x1] %vm332_vm14, %v328_v27  ;;  %vm2103_vm14 = vcmp.lt.s32.totalorder %v209_v1, 115  ;;  %v613_v27 = vstv %s2197_s19  ;;  %s2244_s19 = sld [smem:[#allocation8 + $0x3f]] }
  0xf0   : > { %383 = vst.msk [vmem:[#allocation3 + $0x1] sm:$0x3] %vm361_vm15, %v381_v28  ;;  %362 = vst.msk [vmem:[#allocation2 + $0x1] sm:$0x3] %vm361_vm15, %v357_v29  ;;  %vm2108_vm15 = vcmp.ge.s32.totalorder %v209_v1, 121 }
  0xf1   : > { %vm447_vm3 = vmand %vm2108_vm15, %vm2113_vm0  ;;  %v658_v47 = vstv %s2233_s6  ;;  %s1681_s6 = smov 104   ;;  %vm592_vm15 = vcmask 859136   ;;  %vm607_vm0 = vcmask 850944  }
  0xf2   : > { %v392_v30 = vpop.permute.xlu1 %391  ;;  %v385_v31 = vpop.permute.xlu0 %384 }
  0xf3   : > { %394 = vst.msk [vmem:[#allocation3 + $0x2] sm:$0x1] %vm389_vm2, %v392_v30  ;;  %390 = vst.msk [vmem:[#allocation2 + $0x2] sm:$0x1] %vm389_vm2, %v385_v31 }
  0xf4   : > { %vm433_vm2 = vmand %vm2098_vm10, %vm2103_vm14  ;;  %vm562_vm10 = vcmask 998400   ;;  %vm577_vm14 = vcmask 867328  }
  0xf6   : > { %v403_v32 = vpop.permute.xlu1 %402  ;;  %v396_v33 = vpop.permute.xlu0 %395 }
  0xf7   : > { %405 = vst.msk [vmem:[#allocation3 + $0x2] sm:$0x1] %vm400_vm5, %v403_v32  ;;  %401 = vst.msk [vmem:[#allocation2 + $0x2] sm:$0x1] %vm400_vm5, %v396_v33  ;;  %vm2135_vm5 = vcmp.lt.s32.totalorder %v209_v1, 31  ;;  %v615_v32 = vstv %s2205_s15  ;;  %v598_v33 = vstv %s2209_s7  ;;  %s2253_s15 = sld [smem:[#allocation8 + $0x40]] }
  0xf8   : > { %vm460_vm6 = vmand %vm2130_vm4, %vm2135_vm5  ;;  %s2260_s7 = sld [smem:[#allocation8 + $0x10]]  ;;  %vm667_vm4 = vcmask 818176   ;;  %vm684_vm5 = vcmask 687104  }
  0xfa   : > { %v414_v34 = vpop.permute.xlu1 %413  ;;  %v407_v35 = vpop.permute.xlu0 %406 }
  0xfb   : > { %416 = vst.msk [vmem:[#allocation3 + $0x2] sm:$0x1] %vm411_vm8, %v414_v34  ;;  %412 = vst.msk [vmem:[#allocation2 + $0x2] sm:$0x1] %vm411_vm8, %v407_v35  ;;  %v600_v34 = vstv %s2211_s14  ;;  %s2262_s14 = sld [smem:[#allocation8 + $0x41]]  ;;  %vm502_vm8 = vcmask 1031168  }
  0xfe   : > { %v450_v36 = vpop.permute.xlu1 %449  ;;  %v440_v37 = vpop.permute.xlu0 %439 }
  0xff   : > { %v451_v44 = vrot.slane %v450_v36, 7  ;;  %v441_v45 = vrot.slane %v440_v37, 7 }
 0x101   : > { %v452_v50 = vsel %vm442_vm1, %v451_v44, %v450_v36  ;;  %v443_v51 = vsel %vm442_vm1, %v441_v45, %v440_v37  ;;  %v643_v37 = vstv %s2213_s22  ;;  %v630_v44 = vstv %s2227_s27  ;;  %s1679_s22 = smov 106   ;;  %s1680_s27 = smov 103  }
 0x102   : > { %v425_v40 = vpop.permute.xlu1 %424  ;;  %v418_v41 = vpop.permute.xlu0 %417  ;;  %vm622_vm1 = vcmask 842752  }
 0x103   : > { %427 = vst.msk [vmem:[#allocation3 + $0x2] sm:$0x1] %vm422_vm13, %v425_v40  ;;  %423 = vst.msk [vmem:[#allocation2 + $0x2] sm:$0x1] %vm422_vm13, %v418_v41  ;;  %vm547_vm13 = vcmask 1006592  }
 0x106   : > { %v436_v48 = vpop.permute.xlu1 %435  ;;  %v429_v49 = vpop.permute.xlu0 %428 }
 0x107   : > { %438 = vst.msk [vmem:[#allocation3 + $0x2] sm:$0x1] %vm433_vm2, %v436_v48  ;;  %434 = vst.msk [vmem:[#allocation2 + $0x2] sm:$0x1] %vm433_vm2, %v429_v49  ;;  %vm637_vm2 = vcmask 834560  }
 0x108   : > { %454 = vst.msk [vmem:[#allocation3 + $0x2] sm:$0x3] %vm447_vm3, %v452_v50  ;;  %448 = vst.msk [vmem:[#allocation2 + $0x2] sm:$0x3] %vm447_vm3, %v443_v51  ;;  %vm652_vm3 = vcmask 826368  }
 0x10a   : > { %v463_v52 = vpop.permute.xlu1 %462  ;;  %v456_v53 = vpop.permute.xlu0 %455 }
 0x10b   : > { %465 = vst.msk [vmem:[#allocation3 + $0x3] sm:$0x1] %vm460_vm6, %v463_v52  ;;  %461 = vst.msk [vmem:[#allocation2 + $0x3] sm:$0x1] %vm460_vm6, %v456_v53  ;;  %vm699_vm6 = vcmask 678912  }
 0x10f   : > { %v2185_v60 = vld [vmem:[#allocation3] sm:$0x7]  ;;  %v2187_v61 = vld [vmem:[#allocation2] sm:$0x7] }
 0x110   : > { %v494_v0 = vmul.f32 %v493_v54, %v2187_v61  ;;  %v496_v2 = vmul.f32 %v495_v55, %v2185_v60  ;;  %v479_v3 = vmul.f32 %v478_v56, %v2187_v61  ;;  %v481_v4 = vmul.f32 %v480_v57, %v2185_v60 }
 0x111   : > { %v524_v5 = vmul.f32 %v523_v58, %v2187_v61  ;;  %v526_v6 = vmul.f32 %v525_v59, %v2185_v60  ;;  %v509_v11 = vmul.f32 %v508_v62, %v2187_v61  ;;  %v511_v12 = vmul.f32 %v510_v63, %v2185_v60 }
 0x112   : > { %v497_v9 = vadd.f32 %v496_v2, %v494_v0  ;;  %v482_v10 = vadd.f32 %v481_v4, %v479_v3  ;;  %v554_v15 = vmul.f32 %v553_v7, %v2187_v61  ;;  %v556_v16 = vmul.f32 %v555_v8, %v2185_v60  ;;  %v2276_v52 = vld [vmem:[#allocation3] sm:$0xf]  ;;  %v2278_v53 = vld [vmem:[#allocation2] sm:$0xf] }
 0x113   : > { %v527_v19 = vadd.f32 %v526_v6, %v524_v5  ;;  %v512_v20 = vadd.f32 %v511_v12, %v509_v11  ;;  %v539_v21 = vmul.f32 %v538_v13, %v2187_v61  ;;  %v541_v22 = vmul.f32 %v540_v14, %v2185_v60 }
 0x114   : > { %499 = vrot.lane.b32.xlu1 %v497_v9, %s1674_s17  ;;  %484 = vrot.lane.b32.xlu0 %v482_v10, %s1675_s18  ;;  %v584_v25 = vmul.f32 %v583_v17, %v2187_v61  ;;  %v586_v26 = vmul.f32 %v585_v18, %v2185_v60  ;;  %v557_v28 = vadd.f32 %v556_v16, %v554_v15  ;;  %s2617_s17 = smov 122   ;;  %s2248_s18 = sld [smem:[#allocation8 + $0xf]]  ;;  %v660_v54 = vstv %s2237_s3 }
 0x115   : > { %v542_v29 = vadd.f32 %v541_v22, %v539_v21  ;;  %v569_v30 = vmul.f32 %v568_v23, %v2187_v61  ;;  %v571_v31 = vmul.f32 %v570_v24, %v2185_v60  ;;  %v614_v36 = vmul.f32 %v613_v27, %v2187_v61  ;;  %s2295_s3 = sld [smem:[#allocation8 + $0x14]] }
 0x116   : > { %v587_v35 = vadd.f32 %v586_v26, %v584_v25  ;;  %v616_v40 = vmul.f32 %v615_v32, %v2185_v60  ;;  %v599_v41 = vmul.f32 %v598_v33, %v2187_v61  ;;  %v601_v42 = vmul.f32 %v600_v34, %v2185_v60 }
 0x117   : > { %v572_v39 = vadd.f32 %v571_v31, %v569_v30  ;;  %v644_v45 = vmul.f32 %v643_v37, %v2187_v61  ;;  %v646_v46 = vmul.f32 %v645_v38, %v2185_v60  ;;  %v629_v50 = vmul.f32 %v628_v43, %v2187_v61 }
 0x118   : > { %529 = vrot.lane.b32.xlu1 %v527_v19, %s1676_s30  ;;  %514 = vrot.lane.b32.xlu0 %v512_v20, %s1677_s4  ;;  %s2267_s4 = sld [smem:[#allocation8 + $0x42]]  ;;  %v617_v48 = vadd.f32 %v616_v40, %v614_v36  ;;  %v602_v49 = vadd.f32 %v601_v42, %v599_v41  ;;  %v631_v51 = vmul.f32 %v630_v44, %v2185_v60  ;;  %v674_v55 = vstv %s2242_s8  ;;  %s2297_s8 = sld [smem:[#allocation8 + $0x45]] }
 0x119   : > { %v677_v56 = vstv %s2244_s19  ;;  %v647_v57 = vadd.f32 %v646_v46, %v644_v45  ;;  %v659_v58 = vmul.f32 %v658_v47, %v2187_v61  ;;  %v692_v62 = vstv %s2253_s15  ;;  %s2301_s19 = sld [smem:[#allocation8 + $0x15]]  ;;  %s1682_s15 = smov 101  }
 0x11a   : > { %v690_v59 = vstv %s2248_s18  ;;  %v632_v63 = vadd.f32 %v631_v51, %v629_v50  ;;  %v661_v0 = vmul.f32 %v660_v54, %v2185_v60  ;;  %v675_v2 = vmul.f32 %v674_v55, %v2278_v53  ;;  %s2303_s18 = sld [smem:[#allocation8 + $0x46]] }
 0x11b   : > { %v678_v3 = vmul.f32 %v677_v56, %v2276_v52  ;;  %v705_v4 = vstv %s2260_s7  ;;  %v707_v5 = vstv %s2262_s14  ;;  %v691_v6 = vmul.f32 %v690_v59, %v2278_v53  ;;  %s2311_s7 = sld [smem:[#allocation8]]  ;;  %s2317_s14 = sld [smem:[#allocation8 + $0x47]] }
 0x11c   : > { %559 = vrot.lane.b32.xlu1 %v557_v28, %s2617_s17  ;;  %544 = vrot.lane.b32.xlu0 %v542_v29, %s2618_s25  ;;  %s2287_s17 = sld [smem:[#allocation8 + $0x44]]  ;;  %v693_v7 = vmul.f32 %v692_v62, %v2276_v52  ;;  %v720_v8 = vstv %s2265_s24  ;;  %v662_v10 = vadd.f32 %v661_v0, %v659_v58  ;;  %v706_v12 = vmul.f32 %v705_v4, %v2278_v53  ;;  %s1684_s24 = smov 100  }
 0x11d   : > { %v679_v11 = vadd.f32 %v678_v3, %v675_v2  ;;  %v708_v13 = vmul.f32 %v707_v5, %v2276_v52  ;;  %v736_v15 = vstv %s2283_s26  ;;  %v721_v16 = vmul.f32 %v720_v8, %v2278_v53  ;;  %s2333_s26 = sld [smem:[#allocation8 + $0x18]]  ;;  %s2339_s25 = sld [smem:[#allocation8 + $0x19]] }
 0x11e   : > { %v722_v9 = vstv %s2267_s4  ;;  %s1685_s4 = smov 84   ;;  %v694_v19 = vadd.f32 %v693_v7, %v691_v6  ;;  %v737_v22 = vmul.f32 %v736_v15, %v2276_v52  ;;  %v764_v24 = vstv %s2295_s3  ;;  %s2350_s3 = sld [smem:[#allocation8 + $0x1a]] }
 0x11f   : > { %v723_v17 = vmul.f32 %v722_v9, %v2276_v52  ;;  %v709_v20 = vadd.f32 %v708_v13, %v706_v12  ;;  %v766_v25 = vstv %s2297_s8  ;;  %v779_v26 = vstv %s2301_s19  ;;  %s2352_s8 = sld [smem:[#allocation8 + $0x4b]]  ;;  %s1688_s19 = smov 80  }
 0x120   : > { %589 = vrot.lane.b32.xlu1 %v587_v35, %s1665_s23  ;;  %574 = vrot.lane.b32.xlu0 %v572_v39, %s1679_s22  ;;  %s2274_s23 = sld [smem:[#allocation8 + $0x12]]  ;;  %s2285_s22 = sld [smem:[#allocation8 + $0x13]]  ;;  %v781_v27 = vstv %s2303_s18  ;;  %v765_v34 = vmul.f32 %v764_v24, %v2278_v53  ;;  %v767_v35 = vmul.f32 %v766_v25, %v2276_v52  ;;  %v780_v39 = vmul.f32 %v779_v26, %v2278_v53 }
 0x121   : > { %v724_v28 = vadd.f32 %v723_v17, %v721_v16  ;;  %v469_v31 = vstv %s2311_s7  ;;  %v796_v36 = vstv %s2317_s14  ;;  %s2357_s18 = sld [smem:[#allocation8 + $0x1b]]  ;;  %v782_v40 = vmul.f32 %v781_v27, %v2276_v52  ;;  %s2372_s7 = sld [smem:[#allocation8 + $0x4d]] }
 0x122   : > { %v751_v23 = vstv %s2287_s17  ;;  %s2343_s17 = sld [smem:[#allocation8 + $0x4a]]  ;;  %v470_v42 = vmul.f32 %v469_v31, %v2187_v61  ;;  %v768_v44 = vadd.f32 %v767_v35, %v765_v34  ;;  %v797_v45 = vmul.f32 %v796_v36, %v2276_v52  ;;  %s1689_s14 = smov 79  }
 0x123   : > { %v752_v33 = vmul.f32 %v751_v23, %v2276_v52  ;;  %v783_v50 = vadd.f32 %v782_v40, %v780_v39  ;;  %v839_v51 = vstv %s2339_s25  ;;  %s1691_s25 = smov 62  }
 0x124   : > { %619 = vrot.lane.b32.xlu1 %v617_v48, %s1680_s27  ;;  %604 = vrot.lane.b32.xlu0 %v602_v49, %s1681_s6  ;;  %s1683_s27 = smov 102   ;;  %s2305_s6 = sld [smem:[#allocation8 + $0x16]]  ;;  %v824_v48 = vstv %s2333_s26  ;;  %v854_v59 = vstv %s2350_s3 }
 0x125   : > { %v856_v62 = vstv %s2352_s8  ;;  %s2388_s26 = sld [smem:[#allocation8 + $0x1e]]  ;;  %v855_v6 = vmul.f32 %v854_v59, %v2278_v53  ;;  %s2404_s3 = sld [smem:[#allocation8 + $0x20]] }
 0x126   : > { %v734_v14 = vstv %s2274_s23  ;;  %v749_v18 = vstv %s2285_s22  ;;  %s2328_s23 = sld [smem:[#allocation8 + $0x48]]  ;;  %s1687_s22 = smov 82   ;;  %v857_v7 = vmul.f32 %v856_v62, %v2276_v52 }
 0x127   : > { %v735_v21 = vmul.f32 %v734_v14, %v2278_v53  ;;  %v750_v29 = vmul.f32 %v749_v18, %v2278_v53  ;;  %v869_v2 = vstv %s2357_s18  ;;  %v886_v9 = vstv %s2372_s7  ;;  %s2406_s8 = sld [smem:[#allocation8 + $0x51]]  ;;  %s1694_s18 = smov 59  }
 0x128   : > { %649 = vrot.lane.b32.xlu1 %v647_v57, %s1682_s15  ;;  %634 = vrot.lane.b32.xlu0 %v632_v63, %s1683_s27  ;;  %s2319_s15 = sld [smem:[#allocation8 + $0x31]]  ;;  %s2321_s27 = sld [smem:[#allocation8 + $0x17]]  ;;  %v841_v54 = vstv %s2343_s17  ;;  %v825_v57 = vmul.f32 %v824_v48, %v2278_v53  ;;  %v840_v63 = vmul.f32 %v839_v51, %v2278_v53  ;;  %v858_v14 = vadd.f32 %v857_v7, %v855_v6 }
 0x129   : > { %v738_v32 = vadd.f32 %v737_v22, %v735_v21  ;;  %v753_v43 = vadd.f32 %v752_v33, %v750_v29  ;;  %s2394_s17 = sld [smem:[#allocation8 + $0x50]]  ;;  %v842_v0 = vmul.f32 %v841_v54, %v2276_v52  ;;  %v887_v16 = vmul.f32 %v886_v9, %v2276_v52  ;;  %s2420_s7 = sld [smem:[#allocation8 + $0x22]] }
 0x12a   : > { %v794_v30 = vstv %s2305_s6  ;;  %s2359_s6 = sld [smem:[#allocation8 + $0x4c]] }
 0x12b   : > { %v795_v41 = vmul.f32 %v794_v30, %v2278_v53  ;;  %v843_v13 = vadd.f32 %v842_v0, %v840_v63  ;;  %v914_v18 = vstv %s2388_s26  ;;  %s2438_s26 = sld [smem:[#allocation8 + $0x55]] }
 0x12c   : > { %664 = vrot.lane.b32.xlu0 %v662_v10, %s1684_s24  ;;  %681 = vrot.lane.b32.xlu1 %v679_v11, %s1685_s4  ;;  %s2335_s24 = sld [smem:[#allocation8 + $0x49]]  ;;  %s1686_s4 = smov 83   ;;  %v811_v47 = vstv %s2328_s23  ;;  %v870_v10 = vmul.f32 %v869_v2, %v2278_v53  ;;  %v915_v26 = vmul.f32 %v914_v18, %v2278_v53  ;;  %v1094_v18 = vld [vmem:[#allocation2 + $0x1] sm:$0x7] }
 0x12d   : > { %v798_v55 = vadd.f32 %v797_v45, %v795_v41  ;;  %v812_v56 = vmul.f32 %v811_v47, %v2276_v52  ;;  %s2384_s23 = sld [smem:[#allocation8 + $0x4e]]  ;;  %v946_v29 = vstv %s2406_s8  ;;  %s2454_s8 = sld [smem:[#allocation8 + $0x57]] }
 0x12e   : > { %v472_v37 = vstv %s2319_s15  ;;  %v809_v38 = vstv %s2321_s27  ;;  %s1690_s15 = smov 78   ;;  %s2374_s27 = sld [smem:[#allocation8 + $0x1d]]  ;;  %v947_v36 = vmul.f32 %v946_v29, %v2276_v52 }
 0x12f   : > { %v473_v46 = vmul.f32 %v472_v37, %v2185_v60  ;;  %v810_v60 = vmul.f32 %v809_v38, %v2278_v53  ;;  %v931_v23 = vstv %s2394_s17  ;;  %s2440_s17 = sld [smem:[#allocation8 + $0x25]]  ;;  %v974_v38 = vstv %s2420_s7  ;;  %s2468_s7 = sld [smem:[#allocation8 + $0x28]] }
 0x130   : > { %696 = vrot.lane.b32.xlu0 %v694_v19, %s1686_s4  ;;  %711 = vrot.lane.b32.xlu1 %v709_v20, %s1687_s22  ;;  %s1692_s4 = smov 61   ;;  %s2392_s22 = sld [smem:[#allocation8 + $0x1f]]  ;;  %v871_v3 = vstv %s2359_s6  ;;  %v932_v31 = vmul.f32 %v931_v23, %v2276_v52 }
 0x131   : > { %v2376_v61 = vadd.f32 %v473_v46, %v470_v42  ;;  %v813_v4 = vadd.f32 %v812_v56, %v810_v60  ;;  %s2408_s6 = sld [smem:[#allocation8 + $0x21]]  ;;  %v872_v11 = vmul.f32 %v871_v3, %v2276_v52  ;;  %v975_v46 = vmul.f32 %v974_v38, %v2278_v53 }
 0x132   : > { %v826_v49 = vstv %s2335_s24  ;;  %s2390_s24 = sld [smem:[#allocation8 + $0x4f]] }
 0x133   : > { %v827_v58 = vmul.f32 %v826_v49, %v2276_v52  ;;  %v901_v17 = vstv %s2384_s23  ;;  %v873_v20 = vadd.f32 %v872_v11, %v870_v10  ;;  %s2436_s23 = sld [smem:[#allocation8 + $0x24]]  ;;  %v1006_v49 = vstv %s2438_s26  ;;  %s2486_s26 = sld [smem:[#allocation8 + $0x5b]] }
 0x134   : > { %726 = vrot.lane.b32.xlu0 %v724_v28, %s1659_s20  ;;  %740 = vrot.lane.b32.xlu1 %v738_v32, %s1688_s19  ;;  %s2370_s20 = sld [smem:[#allocation8 + $0x1c]]  ;;  %s1693_s19 = smov 60   ;;  %v899_v12 = vstv %s2374_s27  ;;  %v902_v25 = vmul.f32 %v901_v17, %v2276_v52  ;;  %v944_v28 = vstv %s2404_s3 }
 0x135   : > { %v828_v5 = vadd.f32 %v827_v58, %v825_v57  ;;  %s1696_s27 = smov 57   ;;  %v900_v21 = vmul.f32 %v899_v12, %v2278_v53  ;;  %v945_v35 = vmul.f32 %v944_v28, %v2278_v53  ;;  %s2452_s3 = sld [smem:[#allocation8 + $0x26]]  ;;  %v1019_v51 = vstv %s2440_s17 }
 0x136   : > { %v929_v22 = vstv %s2392_s22  ;;  %s1698_s22 = smov 40   ;;  %v1007_v58 = vmul.f32 %v1006_v49, %v2276_v52  ;;  %v1036_v62 = vstv %s2454_s8  ;;  %s1704_s17 = smov 34   ;;  %v1020_v63 = vmul.f32 %v1019_v51, %v2278_v53 }
 0x137   : > { %v930_v30 = vmul.f32 %v929_v22, %v2278_v53  ;;  %v959_v32 = vstv %s2408_s6  ;;  %v903_v33 = vadd.f32 %v902_v25, %v900_v21  ;;  %s1700_s6 = smov 38   ;;  %v1037_v6 = vmul.f32 %v1036_v62, %v2276_v52  ;;  %s2500_s8 = sld [smem:[#allocation8 + $0x2c]] }
 0x138   : > { %755 = vrot.lane.b32.xlu0 %v753_v43, %s1689_s14  ;;  %770 = vrot.lane.b32.xlu1 %v768_v44, %s1690_s15  ;;  %v916_v19 = vstv %s2390_s24  ;;  %s2422_s14 = sld [smem:[#allocation8 + $0x53]]  ;;  %s1695_s15 = smov 58   ;;  %v960_v41 = vmul.f32 %v959_v32, %v2278_v53  ;;  %v948_v44 = vadd.f32 %v947_v36, %v945_v35 }
 0x139   : > { %v917_v27 = vmul.f32 %v916_v19, %v2276_v52  ;;  %s1697_s24 = smov 56   ;;  %v933_v40 = vadd.f32 %v932_v31, %v930_v30  ;;  %v1004_v48 = vstv %s2436_s23  ;;  %s2484_s23 = sld [smem:[#allocation8 + $0x2a]]  ;;  %v1098_v21 = vstv %s2486_s26 }
 0x13a   : > { %v884_v8 = vstv %s2370_s20  ;;  %s2415_s20 = sld [smem:[#allocation8 + $0x52]]  ;;  %v1005_v57 = vmul.f32 %v1004_v48, %v2278_v53  ;;  %s2530_s26 = sld [smem:[#allocation8 + $0x30]] }
 0x13b   : > { %v885_v15 = vmul.f32 %v884_v8, %v2278_v53  ;;  %v918_v34 = vadd.f32 %v917_v27, %v915_v26  ;;  %v1034_v59 = vstv %s2452_s3  ;;  %s2495_s3 = sld [smem:[#allocation8 + $0x5c]]  ;;  %v1064_v8 = vstv %s2468_s7  ;;  %s2518_s7 = sld [smem:[#allocation8 + $0x5f]] }
 0x13c   : > { %785 = vrot.lane.b32.xlu0 %v783_v50, %s1691_s25  ;;  %800 = vrot.lane.b32.xlu1 %v798_v55, %s1692_s4  ;;  %s2424_s25 = sld [smem:[#allocation8 + $0x23]]  ;;  %s2426_s4 = sld [smem:[#allocation8 + $0x54]] }
 0x13d   : > { %v888_v24 = vadd.f32 %v887_v16, %v885_v15  ;;  %v1065_v16 = vmul.f32 %v1064_v8, %v2278_v53  ;;  %v1124_v30 = vstv %s2500_s8  ;;  %s2689_s8 = smov 123  }
 0x13e   : > { %v976_v39 = vstv %s2422_s14  ;;  %s2470_s14 = sld [smem:[#allocation8 + $0x59]]  ;;  %v1125_v36 = vmul.f32 %v1124_v30, %v1094_v18 }
 0x13f   : > { %v977_v47 = vmul.f32 %v976_v39, %v2276_v52  ;;  %v1095_v19 = vstv %s2484_s23  ;;  %s2525_s23 = sld [smem:[#allocation8 + $0x60]] }
 0x140   : > { %815 = vrot.lane.b32.xlu0 %v813_v4, %s1693_s19  ;;  %830 = vrot.lane.b32.xlu1 %v828_v5, %s1694_s18  ;;  %s2442_s19 = sld [smem:[#allocation8 + $0x56]]  ;;  %v961_v37 = vstv %s2415_s20  ;;  %s1699_s18 = smov 39   ;;  %v1008_v4 = vadd.f32 %v1007_v58, %v1005_v57  ;;  %v1035_v5 = vmul.f32 %v1034_v59, %v2278_v53  ;;  %v1096_v27 = vmul.f32 %v1095_v19, %v1094_v18 }
 0x141   : > { %v962_v45 = vmul.f32 %v961_v37, %v2276_v52  ;;  %s2464_s20 = sld [smem:[#allocation8 + $0x58]]  ;;  %v978_v56 = vadd.f32 %v977_v47, %v975_v46  ;;  %v1112_v29 = vstv %s2495_s3  ;;  %v1155_v39 = vstv %s2518_s7  ;;  %s1710_s3 = smov 12  }
 0x142   : > { %v989_v42 = vstv %s2424_s25  ;;  %v991_v43 = vstv %s2426_s4  ;;  %s1702_s25 = smov 36   ;;  %s2472_s4 = sld [smem:[#allocation8 + $0x29]]  ;;  %v1183_v48 = vstv %s2530_s26 }
 0x143   : > { %v990_v50 = vmul.f32 %v989_v42, %v2278_v53  ;;  %v992_v60 = vmul.f32 %v991_v43, %v2276_v52  ;;  %v963_v55 = vadd.f32 %v962_v45, %v960_v41  ;;  %s1206_s26 = scalar_lea.sflag [#allocation6], %s1863_s5 }
 0x144   : > { %845 = vrot.lane.b32.xlu0 %v843_v13, %s1695_s15  ;;  %860 = vrot.lane.b32.xlu1 %v858_v14, %s1696_s27  ;;  %s2456_s15 = sld [smem:[#allocation8 + $0x27]]  ;;  %s1701_s27 = smov 37   ;;  %v1066_v9 = vstv %s2470_s14  ;;  %v1038_v14 = vadd.f32 %v1037_v6, %v1035_v5 }
 0x145   : > { %v993_v3 = vadd.f32 %v992_v60, %v990_v50  ;;  %v1067_v17 = vmul.f32 %v1066_v9, %v2276_v52  ;;  %s1707_s14 = smov 16   ;;  %v1170_v47 = vstv %s2525_s23 }
 0x146   : > { %v1021_v54 = vstv %s2442_s19  ;;  %s2488_s19 = sld [smem:[#allocation8 + $0x2b]] }
 0x147   : > { %v1022_v0 = vmul.f32 %v1021_v54, %v2276_v52  ;;  %v1051_v7 = vstv %s2464_s20  ;;  %s2514_s20 = sld [smem:[#allocation8 + $0x2e]]  ;;  %v1068_v26 = vadd.f32 %v1067_v17, %v1065_v16 }
 0x148   : > { %875 = vrot.lane.b32.xlu0 %v873_v20, %s1697_s24  ;;  %890 = vrot.lane.b32.xlu1 %v888_v24, %s1698_s22  ;;  %s2474_s24 = sld [smem:[#allocation8 + $0x5a]]  ;;  %s1703_s22 = smov 35   ;;  %v1079_v12 = vstv %s2472_s4  ;;  %v1052_v15 = vmul.f32 %v1051_v7, %v2276_v52  ;;  %v1097_v20 = vld [vmem:[#allocation3 + $0x1] sm:$0x7] }
 0x149   : > { %v1023_v10 = vadd.f32 %v1022_v0, %v1020_v63  ;;  %s1708_s4 = smov 15   ;;  %v1080_v22 = vmul.f32 %v1079_v12, %v2278_v53  ;;  %v1099_v28 = vmul.f32 %v1098_v21, %v1097_v20  ;;  %v1113_v35 = vmul.f32 %v1112_v29, %v1097_v20 }
 0x14a   : > { %v1049_v2 = vstv %s2456_s15  ;;  %s1706_s15 = smov 17   ;;  %v1156_v46 = vmul.f32 %v1155_v39, %v1097_v20  ;;  %v1171_v54 = vmul.f32 %v1170_v47, %v1097_v20 }
 0x14b   : > { %v1050_v11 = vmul.f32 %v1049_v2, %v2278_v53 }
 0x14c   : > { %905 = vrot.lane.b32.xlu0 %v903_v33, %s1699_s18  ;;  %920 = vrot.lane.b32.xlu1 %v918_v34, %s1700_s6  ;;  %s2502_s18 = sld [smem:[#allocation8 + $0x5d]]  ;;  %s1705_s6 = smov 18   ;;  %v1110_v24 = vstv %s2488_s19  ;;  %v1100_v34 = vadd.f32 %v1099_v28, %v1096_v27 }
 0x14d   : > { %v1053_v25 = vadd.f32 %v1052_v15, %v1050_v11  ;;  %s2688_s19 = smov 13   ;;  %v1111_v53 = vmul.f32 %v1110_v24, %v1094_v18  ;;  %v1153_v38 = vstv %s2514_s20  ;;  %s1415_s20 = smul.u32 48, %s1752_s13 }
 0x14e   : > { %v1081_v13 = vstv %s2474_s24  ;;  %s2523_s24 = sld [smem:[#allocation8 + $0x2f]]  ;;  %v1154_v45 = vmul.f32 %v1153_v38, %v1094_v18  ;;  %s1715_s13 = smov [#allocation9]  }
 0x14f   : > { %v1082_v23 = vmul.f32 %v1081_v13, %v2276_v52  ;;  %v1114_v43 = vadd.f32 %v1113_v35, %v1111_v53  ;;  %s2560_s23 = scalar_lea.hbm %s2606_s2, %s1415_s20 }
 0x150   : > { %935 = vrot.lane.b32.xlu0 %v933_v40, %s1701_s27  ;;  %950 = vrot.lane.b32.xlu1 %v948_v44, %s1702_s25  ;;  %s2504_s27 = sld [smem:[#allocation8 + $0x2d]]  ;;  %s2506_s25 = sld [smem:[#allocation8 + $0x5e]]  ;;  %v1157_v51 = vadd.f32 %v1156_v46, %v1154_v45 }
 0x151   : > { %v1083_v52 = vadd.f32 %v1082_v23, %v1080_v22 }
 0x152   : > { %v1126_v31 = vstv %s2502_s18  ;;  %s2690_s18 = smov 122  }
 0x153   : > { %v1127_v37 = vmul.f32 %v1126_v31, %v1097_v20 }
 0x154   : > { %965 = vrot.lane.b32.xlu0 %v963_v55, %s1703_s22  ;;  %980 = vrot.lane.b32.xlu1 %v978_v56, %s1704_s17  ;;  %s2532_s22 = sld [smem:[#allocation8 + $0x61]]  ;;  %s1709_s17 = smov 14   ;;  %v1168_v42 = vstv %s2523_s24  ;;  %v1184_v55 = vmul.f32 %v1183_v48, %v1094_v18 }
 0x155   : > { %v1128_v44 = vadd.f32 %v1127_v37, %v1125_v36  ;;  %v1169_v60 = vmul.f32 %v1168_v42, %v1094_v18 }
 0x156   : > { %v1138_v32 = vstv %s2504_s27  ;;  %v1140_v33 = vstv %s2506_s25  ;;  %s1714_s27 = smov 118   ;;  %s1414_s25 = smul.u32 3, %s1863_s5 }
 0x157   : > { %v1139_v40 = vmul.f32 %v1138_v32, %v1094_v18  ;;  %v1141_v41 = vmul.f32 %v1140_v33, %v1097_v20  ;;  %v1172_v57 = vadd.f32 %v1171_v54, %v1169_v60 }
 0x158   : > { %995 = vrot.lane.b32.xlu0 %v993_v3, %s1705_s6  ;;  %1010 = vrot.lane.b32.xlu1 %v1008_v4, %s1706_s15  ;;  %s1712_s6 = smov 120   ;;  %s1713_s15 = smov 119  }
 0x159   : > { %v1142_v50 = vadd.f32 %v1141_v41, %v1139_v40  ;;  %s173_s7 = scalar_lea.vmem [#allocation9], %s1414_s25 }
 0x15a   : > { %v1185_v49 = vstv %s2532_s22 }
 0x15b   : > { %v1186_v56 = vmul.f32 %v1185_v49, %v1097_v20 }
 0x15c   : > { %1025 = vrot.lane.b32.xlu0 %v1023_v10, %s1707_s14  ;;  %1040 = vrot.lane.b32.xlu1 %v1038_v14, %s1708_s4  ;;  %s1220_s14 = sshll.u32 %s173_s7, 4  ;;  %s2562_s14 = int_to_ptr.vmem [resolvable:$true] %s1220_s14 }
 0x15d   : > { %v1187_v58 = vadd.f32 %v1186_v56, %v1184_v55  ;;  %s1582_s22 = scalar_lea.vmem %s2562_s14, 48 }
 0x15e   : > { %p1583_p8 = scmp.ne.s32.totalorder %s2562_s14, %s1582_s22 }
 0x160   : > { %1055 = vrot.lane.b32.xlu0 %v1053_v25, %s1709_s17  ;;  %1070 = vrot.lane.b32.xlu1 %v1068_v26, %s2688_s19  ;;  %p1584_p13 = pnand %p1583_p8, %p2691_p11  ;;  %s1586_s17 = sshll.u32 %s1715_s13, 4  ;;  %s1587_s17 = int_to_ptr.vmem [resolvable:$false] %s1586_s17 }
 0x161   : > { %s1588_s19 = scalar_lea.vmem %s1587_s17, 96  ;;  %p1589_p0 = scmp.lt.s32.totalorder %s2562_s14, %s1587_s17 }
 0x162   : > { %p1585_p7 = pneg %p1584_p13  ;;  %p1590_p3 = scmp.lt.s32.totalorder %s1588_s19, %s1582_s22 }
 0x164   : > { %1085 = vrot.lane.b32.xlu0 %v1083_v52, %s1710_s3  ;;  %1102 = vrot.lane.b32.xlu1 %v1100_v34, %s1676_s30  ;;  %s1711_s30 = smov 121   ;;  %p1591_p12 = por %p1590_p3, %p1589_p0 }
 0x166   : > { %p1592_p5 = pnand %p1591_p12, %p1585_p7 }
 0x168   : > { %1116 = vrot.lane.b32.xlu0 %v1114_v43, %s2689_s8  ;;  %1130 = vrot.lane.b32.xlu1 %v1128_v44, %s2690_s18 }
 0x16c   : > { %1144 = vrot.lane.b32.xlu0 %v1142_v50, %s1711_s30  ;;  %1159 = vrot.lane.b32.xlu1 %v1157_v51, %s1712_s6 }
 0x170   : > { %1174 = vrot.lane.b32.xlu0 %v1172_v57, %s1713_s15  ;;  %1189 = vrot.lane.b32.xlu1 %v1187_v58, %s1714_s27 }
 0x186   : > { %v500_v59 = vpop.permute.xlu1 %499  ;;  %v485_v62 = vpop.permute.xlu0 %484 }
 0x187   : > { %v501_v63 = vrot.slane %v500_v59, 1  ;;  %v486_v0 = vrot.slane %v485_v62, 1 }
 0x189   : > { %v488_v2 = vsel %vm487_vm7, %v485_v62, %v486_v0  ;;  %v503_v6 = vsel %vm502_vm8, %v500_v59, %v501_v63  ;;  %vm714_vm7 = vcmask 670720   ;;  %vm743_vm8 = vcmask 654336  }
 0x18a   : > { %v490_v3 = vadd.f32 %v488_v2, %v2376_v61  ;;  %v530_v4 = vpop.permute.xlu1 %529  ;;  %v515_v5 = vpop.permute.xlu0 %514 }
 0x18b   : > { %v531_v7 = vrot.slane %v530_v4, 1  ;;  %v516_v8 = vrot.slane %v515_v5, 1 }
 0x18c   : > { %v505_v9 = vadd.f32 %v503_v6, %v490_v3 }
 0x18d   : > { %v518_v10 = vsel %vm517_vm12, %v515_v5, %v516_v8  ;;  %v533_v14 = vsel %vm532_vm11, %v530_v4, %v531_v7  ;;  %vm758_vm12 = vcmask 646144  }
 0x18e   : > { %v520_v11 = vadd.f32 %v518_v10, %v505_v9  ;;  %v560_v12 = vpop.permute.xlu1 %559  ;;  %v545_v13 = vpop.permute.xlu0 %544 }
 0x18f   : > { %v561_v15 = vrot.slane %v560_v12, 1  ;;  %v546_v16 = vrot.slane %v545_v13, 1 }
 0x190   : > { %v535_v17 = vadd.f32 %v533_v14, %v520_v11 }
 0x191   : > { %v548_v61 = vsel %vm547_vm13, %v545_v13, %v546_v16  ;;  %v563_v21 = vsel %vm562_vm10, %v560_v12, %v561_v15 }
 0x192   : > { %v550_v18 = vadd.f32 %v548_v61, %v535_v17  ;;  %v590_v19 = vpop.permute.xlu1 %589  ;;  %v575_v20 = vpop.permute.xlu0 %574 }
 0x193   : > { %v591_v22 = vrot.slane %v590_v19, 1  ;;  %v576_v23 = vrot.slane %v575_v20, 1 }
 0x194   : > { %v565_v24 = vadd.f32 %v563_v21, %v550_v18 }
 0x195   : > { %v578_v25 = vsel %vm577_vm14, %v575_v20, %v576_v23  ;;  %v593_v29 = vsel %vm592_vm15, %v590_v19, %v591_v22  ;;  %vm773_vm14 = vcmask 637952   ;;  %vm788_vm15 = vcmask 506880  }
 0x196   : > { %v580_v26 = vadd.f32 %v578_v25, %v565_v24  ;;  %v620_v27 = vpop.permute.xlu1 %619  ;;  %v605_v28 = vpop.permute.xlu0 %604 }
 0x197   : > { %v621_v30 = vrot.slane %v620_v27, 1  ;;  %v606_v31 = vrot.slane %v605_v28, 1 }
 0x198   : > { %v595_v52 = vadd.f32 %v593_v29, %v580_v26 }
 0x199   : > { %v608_v53 = vsel %vm607_vm0, %v605_v28, %v606_v31  ;;  %v623_v35 = vsel %vm622_vm1, %v620_v27, %v621_v30  ;;  %vm803_vm0 = vcmask 498688   ;;  %vm833_vm1 = vcmask 482304  }
 0x19a   : > { %v610_v32 = vadd.f32 %v608_v53, %v595_v52  ;;  %v650_v33 = vpop.permute.xlu1 %649  ;;  %v635_v34 = vpop.permute.xlu0 %634 }
 0x19b   : > { %v651_v36 = vrot.slane %v650_v33, 1  ;;  %v636_v37 = vrot.slane %v635_v34, 1 }
 0x19c   : > { %v625_v38 = vadd.f32 %v623_v35, %v610_v32 }
 0x19d   : > { %v638_v39 = vsel %vm637_vm2, %v635_v34, %v636_v37  ;;  %v653_v43 = vsel %vm652_vm3, %v650_v33, %v651_v36  ;;  %vm848_vm2 = vcmask 474112   ;;  %vm863_vm3 = vcmask 465920  }
 0x19e   : > { %v640_v40 = vadd.f32 %v638_v39, %v625_v38  ;;  %v682_v41 = vpop.permute.xlu1 %681  ;;  %v665_v42 = vpop.permute.xlu0 %664 }
 0x19f   : > { %v683_v44 = vrot.slane %v682_v41, 1  ;;  %v666_v45 = vrot.slane %v665_v42, 1 }
 0x1a0   : > { %v655_v46 = vadd.f32 %v653_v43, %v640_v40 }
 0x1a1   : > { %v668_v47 = vsel %vm667_vm4, %v665_v42, %v666_v45  ;;  %v685_v60 = vsel %vm684_vm5, %v682_v41, %v683_v44  ;;  %vm878_vm4 = vcmask 457728   ;;  %vm893_vm5 = vcmask 326656  }
 0x1a2   : > { %v670_v48 = vadd.f32 %v668_v47, %v655_v46  ;;  %v712_v49 = vpop.permute.xlu1 %711  ;;  %v697_v50 = vpop.permute.xlu0 %696 }
 0x1a3   : > { %v713_v51 = vrot.slane %v712_v49, 1  ;;  %v698_v54 = vrot.slane %v697_v50, 1 }
 0x1a4   : > { %v687_v55 = vadd.f32 %v685_v60, %v670_v48 }
 0x1a5   : > { %v700_v56 = vsel %vm699_vm6, %v697_v50, %v698_v54  ;;  %v715_v62 = vsel %vm714_vm7, %v712_v49, %v713_v51  ;;  %vm908_vm6 = vcmask 318464   ;;  %vm923_vm7 = vcmask 310272  }
 0x1a6   : > { %v702_v57 = vadd.f32 %v700_v56, %v687_v55  ;;  %v741_v58 = vpop.permute.xlu1 %740  ;;  %v727_v59 = vpop.permute.xlu0 %726 }
 0x1a7   : > { %v742_v63 = vrot.slane %v741_v58, 1  ;;  %v728_v0 = vrot.slane %v727_v59, 1 }
 0x1a8   : > { %v717_v2 = vadd.f32 %v715_v62, %v702_v57 }
 0x1a9   : > { %v729_v3 = vsel %vm270_vm9, %v727_v59, %v728_v0  ;;  %v744_v7 = vsel %vm743_vm8, %v741_v58, %v742_v63  ;;  %vm818_vm9 = vcmask 490496   ;;  %vm938_vm8 = vcmask 302080  }
 0x1aa   : > { %v731_v4 = vadd.f32 %v729_v3, %v717_v2  ;;  %v771_v5 = vpop.permute.xlu1 %770  ;;  %v756_v6 = vpop.permute.xlu0 %755 }
 0x1ab   : > { %v772_v8 = vrot.slane %v771_v5, 1  ;;  %v757_v9 = vrot.slane %v756_v6, 1 }
 0x1ac   : > { %v746_v10 = vadd.f32 %v744_v7, %v731_v4 }
 0x1ad   : > { %v759_v11 = vsel %vm758_vm12, %v756_v6, %v757_v9  ;;  %v774_v15 = vsel %vm773_vm14, %v771_v5, %v772_v8  ;;  %vm953_vm12 = vcmask 293888   ;;  %vm968_vm14 = vcmask 285696  }
 0x1ae   : > { %v761_v12 = vadd.f32 %v759_v11, %v746_v10  ;;  %v801_v13 = vpop.permute.xlu1 %800  ;;  %v786_v14 = vpop.permute.xlu0 %785 }
 0x1af   : > { %v802_v16 = vrot.slane %v801_v13, 1  ;;  %v787_v17 = vrot.slane %v786_v14, 1 }
 0x1b0   : > { %v776_v61 = vadd.f32 %v774_v15, %v761_v12 }
 0x1b1   : > { %v789_v18 = vsel %vm788_vm15, %v786_v14, %v787_v17  ;;  %v804_v22 = vsel %vm803_vm0, %v801_v13, %v802_v16  ;;  %vm983_vm15 = vcmask 277504   ;;  %vm998_vm0 = vcmask 146432  }
 0x1b2   : > { %v791_v19 = vadd.f32 %v789_v18, %v776_v61  ;;  %v831_v20 = vpop.permute.xlu1 %830  ;;  %v816_v21 = vpop.permute.xlu0 %815 }
 0x1b3   : > { %v832_v23 = vrot.slane %v831_v20, 1  ;;  %v817_v24 = vrot.slane %v816_v21, 1 }
 0x1b4   : > { %v806_v25 = vadd.f32 %v804_v22, %v791_v19 }
 0x1b5   : > { %v819_v26 = vsel %vm818_vm9, %v816_v21, %v817_v24  ;;  %v834_v30 = vsel %vm833_vm1, %v831_v20, %v832_v23  ;;  %vm1013_vm9 = vcmask 138240   ;;  %vm1028_vm1 = vcmask 130048  }
 0x1b6   : > { %v821_v27 = vadd.f32 %v819_v26, %v806_v25  ;;  %v861_v28 = vpop.permute.xlu1 %860  ;;  %v846_v29 = vpop.permute.xlu0 %845 }
 0x1b7   : > { %v862_v31 = vrot.slane %v861_v28, 1  ;;  %v847_v52 = vrot.slane %v846_v29, 1 }
 0x1b8   : > { %v836_v53 = vadd.f32 %v834_v30, %v821_v27 }
 0x1b9   : > { %v849_v32 = vsel %vm848_vm2, %v846_v29, %v847_v52  ;;  %v864_v36 = vsel %vm863_vm3, %v861_v28, %v862_v31  ;;  %vm1043_vm2 = vcmask 121856   ;;  %vm1058_vm3 = vcmask 113664  }
 0x1ba   : > { %v851_v33 = vadd.f32 %v849_v32, %v836_v53  ;;  %v891_v34 = vpop.permute.xlu1 %890  ;;  %v876_v35 = vpop.permute.xlu0 %875 }
 0x1bb   : > { %v892_v37 = vrot.slane %v891_v34, 1  ;;  %v877_v38 = vrot.slane %v876_v35, 1 }
 0x1bc   : > { %v866_v39 = vadd.f32 %v864_v36, %v851_v33 }
 0x1bd   : > { %v879_v40 = vsel %vm878_vm4, %v876_v35, %v877_v38  ;;  %v894_v44 = vsel %vm893_vm5, %v891_v34, %v892_v37  ;;  %vm1073_vm4 = vcmask 105472   ;;  %vm1088_vm5 = vcmask 97280  }
 0x1be   : > { %v881_v41 = vadd.f32 %v879_v40, %v866_v39  ;;  %v921_v42 = vpop.permute.xlu1 %920  ;;  %v906_v43 = vpop.permute.xlu0 %905 }
 0x1bf   : > { %v922_v45 = vrot.slane %v921_v42, 1  ;;  %v907_v46 = vrot.slane %v906_v43, 1 }
 0x1c0   : > { %v896_v47 = vadd.f32 %v894_v44, %v881_v41 }
 0x1c1   : > { %v909_v48 = vsel %vm908_vm6, %v906_v43, %v907_v46  ;;  %v924_v51 = vsel %vm923_vm7, %v921_v42, %v922_v45  ;;  %vm1147_vm6 = vcmask 990208   ;;  %vm1162_vm7 = vcmask 982016  }
 0x1c2   : > { %v911_v49 = vadd.f32 %v909_v48, %v896_v47  ;;  %v951_v50 = vpop.permute.xlu1 %950  ;;  %v936_v60 = vpop.permute.xlu0 %935 }
 0x1c3   : > { %v952_v54 = vrot.slane %v951_v50, 1  ;;  %v937_v55 = vrot.slane %v936_v60, 1 }
 0x1c4   : > { %v926_v56 = vadd.f32 %v924_v51, %v911_v49 }
 0x1c5   : > { %v939_v57 = vsel %vm938_vm8, %v936_v60, %v937_v55  ;;  %v954_v63 = vsel %vm953_vm12, %v951_v50, %v952_v54 }
 0x1c6   : > { %v941_v58 = vadd.f32 %v939_v57, %v926_v56  ;;  %v981_v59 = vpop.permute.xlu1 %980  ;;  %v966_v62 = vpop.permute.xlu0 %965 }
 0x1c7   : > { %v982_v0 = vrot.slane %v981_v59, 1  ;;  %v967_v2 = vrot.slane %v966_v62, 1 }
 0x1c8   : > { %v956_v3 = vadd.f32 %v954_v63, %v941_v58 }
 0x1c9   : > { %v969_v4 = vsel %vm968_vm14, %v966_v62, %v967_v2  ;;  %v984_v8 = vsel %vm983_vm15, %v981_v59, %v982_v0 }
 0x1ca   : > { %v971_v5 = vadd.f32 %v969_v4, %v956_v3  ;;  %v1011_v6 = vpop.permute.xlu1 %1010  ;;  %v996_v7 = vpop.permute.xlu0 %995 }
 0x1cb   : > { %v1012_v9 = vrot.slane %v1011_v6, 1  ;;  %v997_v10 = vrot.slane %v996_v7, 1 }
 0x1cc   : > { %v986_v11 = vadd.f32 %v984_v8, %v971_v5 }
 0x1cd   : > { %v999_v12 = vsel %vm998_vm0, %v996_v7, %v997_v10  ;;  %v1014_v16 = vsel %vm1013_vm9, %v1011_v6, %v1012_v9 }
 0x1ce   : > { %v1001_v13 = vadd.f32 %v999_v12, %v986_v11  ;;  %v1041_v14 = vpop.permute.xlu1 %1040  ;;  %v1026_v15 = vpop.permute.xlu0 %1025 }
 0x1cf   : > { %v1042_v17 = vrot.slane %v1041_v14, 1  ;;  %v1027_v61 = vrot.slane %v1026_v15, 1 }
 0x1d0   : > { %v1016_v18 = vadd.f32 %v1014_v16, %v1001_v13 }
 0x1d1   : > { %v1029_v19 = vsel %vm1028_vm1, %v1026_v15, %v1027_v61  ;;  %v1044_v23 = vsel %vm1043_vm2, %v1041_v14, %v1042_v17 }
 0x1d2   : > { %v1031_v20 = vadd.f32 %v1029_v19, %v1016_v18  ;;  %v1071_v21 = vpop.permute.xlu1 %1070  ;;  %v1056_v22 = vpop.permute.xlu0 %1055 }
 0x1d3   : > { %v1072_v24 = vrot.slane %v1071_v21, 1  ;;  %v1057_v25 = vrot.slane %v1056_v22, 1 }
 0x1d4   : > { %v1046_v26 = vadd.f32 %v1044_v23, %v1031_v20 }
 0x1d5   : > { %v1059_v27 = vsel %vm1058_vm3, %v1056_v22, %v1057_v25  ;;  %v1074_v31 = vsel %vm1073_vm4, %v1071_v21, %v1072_v24 }
 0x1d6   : > { %v1061_v28 = vadd.f32 %v1059_v27, %v1046_v26  ;;  %v1103_v29 = vpop.permute.xlu1 %1102  ;;  %v1086_v30 = vpop.permute.xlu0 %1085 }
 0x1d7   : > { %v1104_v52 = vrot.slane %v1103_v29, 1  ;;  %v1087_v53 = vrot.slane %v1086_v30, 1 }
 0x1d8   : > { %v1076_v32 = vadd.f32 %v1074_v31, %v1061_v28 }
 0x1d9   : > { %v1089_v33 = vsel %vm1088_vm5, %v1086_v30, %v1087_v53  ;;  %v1105_v37 = vsel %vm532_vm11, %v1103_v29, %v1104_v52  ;;  %vm1177_vm11 = vcmask 973824  }
 0x1da   : > { %v1091_v34 = vadd.f32 %v1089_v33, %v1076_v32  ;;  %v1131_v35 = vpop.permute.xlu1 %1130  ;;  %v1117_v36 = vpop.permute.xlu0 %1116 }
 0x1db   : > { %v1132_v38 = vrot.slane %v1131_v35, 1  ;;  %v1118_v39 = vrot.slane %v1117_v36, 1 }
 0x1dc   : > { %v1107_v40 = vadd.f32 %v1105_v37, %v1091_v34 }
 0x1dd   : > { %v1119_v41 = vsel %vm547_vm13, %v1117_v36, %v1118_v39  ;;  %v1133_v45 = vsel %vm562_vm10, %v1131_v35, %v1132_v38  ;;  %vm1192_vm13 = vcmask 965632   ;;  %vm1202_vm10 = vcmp.lt.s32.totalorder %v209_v1, 352 }
 0x1de   : > { %v1121_v42 = vadd.f32 %v1119_v41, %v1107_v40  ;;  %v1160_v43 = vpop.permute.xlu1 %1159  ;;  %v1145_v44 = vpop.permute.xlu0 %1144 }
 0x1df   : > { %v1161_v46 = vrot.slane %v1160_v43, 1  ;;  %v1146_v47 = vrot.slane %v1145_v44, 1 }
 0x1e0   : > { %v1135_v48 = vadd.f32 %v1133_v45, %v1121_v42 }
 0x1e1   : > { %v1148_v49 = vsel %vm1147_vm6, %v1145_v44, %v1146_v47  ;;  %v1163_v54 = vsel %vm1162_vm7, %v1160_v43, %v1161_v46 }
 0x1e2   : > { %v1150_v50 = vadd.f32 %v1148_v49, %v1135_v48  ;;  %v1190_v60 = vpop.permute.xlu1 %1189  ;;  %v1175_v51 = vpop.permute.xlu0 %1174 }
 0x1e3   : > { %v1191_v55 = vrot.slane %v1190_v60, 1  ;;  %v1176_v56 = vrot.slane %v1175_v51, 1 }
 0x1e4   : > { %v1165_v57 = vadd.f32 %v1163_v54, %v1150_v50 }
 0x1e5   : > { %v1178_v58 = vsel %vm1177_vm11, %v1175_v51, %v1176_v56  ;;  %v1193_v62 = vsel %vm1192_vm13, %v1190_v60, %v1191_v55 }
 0x1e6   : > { %v1180_v59 = vadd.f32 %v1178_v58, %v1165_v57 }
 0x1e8   : > { %v1195_v63 = vadd.f32 %v1193_v62, %v1180_v59 }
 0x1ea   : > { %v1409_v0 = vmul.f32 -1.442695, %v1195_v63 }
 0x1ec   : > { %1533 = vpow2.f32 %v1409_v0 }
 0x1f6   : > { %v1534_v2 = vpop.eup %1533 }
 0x1f7   : > { %v1199_v3 = vadd.f32 1.0, %v1534_v2 }
 0x1f9   : > { %1535 = vrcp.f32 %v1199_v3 }
 0x203   : > { %v1536_v4 = vpop.eup %1535 }
 0x204   : > { %1204 = vst.msk [vmem:[%s173_s7] sm:$0x7] %vm1202_vm10, %v1536_v4 }
 0x205   : > { %1595 = shalt.err (!%p1592_p5)
}
 0x206   : > { %s1596_s5 = scalar_lea.hbm %s2560_s23, 48  ;;  %s1600_s18 = scalar_lea.hbm %s2606_s2, 96 }
 0x207   : > { %p1597_p10 = scmp.ne.s32.totalorder %s2560_s23, %s1596_s5  ;;  %p1601_p4 = scmp.lt.u32.totalorder %s2560_s23, %s2606_s2 }
 0x208   : > { %p1602_p6 = scmp.lt.u32.totalorder %s1600_s18, %s1596_s5  ;;  %p1604_p8 = scmp.lt.u32.totalorder %s1596_s5, %s2560_s23 }
 0x209   : > { %p1598_p2 = pnand %p1597_p10, %p2691_p11 }
 0x20a   : > { %p1603_p9 = por %p1602_p6, %p1601_p4 }
 0x20b   : > { %p1599_p1 = pneg %p1598_p2 }
 0x20c   : > { %p1605_p13 = por %p1604_p8, %p1603_p9 }
 0x20e   : > { %p1606_p7 = pnand %p1605_p13, %p1599_p1 }
 0x210   : > { %1609 = shalt.err (!%p1606_p7)
}
 0x211   : > { %1422 = dma.vmem_to_hbm [thread:$0]  (%p2691_p11), %s2562_s14, 48, %s2560_s23, %s1206_s26  }
 0x212 PF: > { %s1232_s15 = sand.u32 1, %s1640_s9   ;;  %p2692_p0 = scmp.ne.s32.totalorder %s2620_s16, 0 }
 0x213   : > { %p2693_p3 = scmp.ge.s32.totalorder %s1652_s12, 2  ;;  %s1233_s27 = scalar_lea.sflag [#allocation6], %s1232_s15 }
 0x215   : > { %p1433_p12 = pnand %p2693_p3, %p2692_p0 }
 0x217   : > { %1635 = dma.done.wait (!%p1433_p12), %s1233_s27, 48  }
 0x218   : > { %1637 = vsyncadd (!%p1433_p12), %s1233_s27, 4294967248  ;;  %p16_p5 = scmp.ge.s32.totalorder %s1782_s21, 4   ;;  %s2694_s9 = smov %s1644_s10 }
 0x219   : > { %s2695_s10 = smov %s1648_s11  ;;  %s2696_s11 = smov %s1806_s28 }
 0x21a   : > { %s2697_s12 = smov %s1782_s21  ;;  %18 = sbr.rel (!%p16_p5) target bundleno = 6 (0x6), region = 78 }
 0x221   :  { %1238 = vsyncpa [#allocation5], 1 }
 0x222   :  { %1240 = vsyncpa [#allocation5 + $0x1], 1 }
 0x223   :  { %1241 = vsyncpa [#allocation6], 1 }
 0x224   :  { %1243 = vsyncpa [#allocation6 + $0x1], 1 }
 0x225   :  { %1244 = vsyncpa [#allocation7], 1 }
 0x226   :  { %1246 = vsyncpa [#allocation7 + $0x1], 1 }

</bundles_post_ra>
